<compile_context>
chip_gen: v7x
topology: tpu7x:2x2x1
jax: 0.10.0
libtpu: 0.0.40
codegen_flags: <defaults>
</compile_context>

<pallas_src>
import numpy as np
import jax
import jax.numpy as jnp
from jax.experimental import pallas as pl
from jax.experimental.pallas import tpu as pltpu

FEATURE_DIM = 96
VQ_COLS = FEATURE_DIM + 2          # [ v(96) | sq | svb ]


def adaptive_pool_matrix(in_len, out_len):
    """P (in_len, out_len) s.t. x @ P == nn.AdaptiveAvgPool1d(out_len)(x)."""
    P = np.zeros((in_len, out_len), dtype=np.float32)
    for o in range(out_len):
        s = (o * in_len) // out_len
        e = -((-((o + 1) * in_len)) // out_len)  # ceil
        P[s:e, o] = 1.0 / float(e - s)
    return P


def _net_reg_kernel(vq_ref, a_ref, sh_ref, hbias_ref,
                    pw1_ref, w1cs_ref, b1_ref, w2_ref, b2_ref, w3_ref, b3_ref,
                    out_ref):
    vq = vq_ref[...]                                        # (BT, 98) f32
    v = vq[:, :FEATURE_DIM]                                 # (BT, 96) pooled B
    sq = vq[:, FEATURE_DIM:FEATURE_DIM + 1]                 # (BT, 1) sum of q
    svb = vq[:, FEATURE_DIM + 1:FEATURE_DIM + 2]            # (BT, 1) sum of v
    sh = sh_ref[...]                                        # (3, 1) sum_x h_mat
    hbias = hbias_ref[...]                                  # (3, 1)

    # --- attention_pooling_layer ----------------------------------------------
    # einsum('bijk,hcxk,bqiv->bjck', a, h_mat, b).transpose(1,2) + h_bias
    # factorises exactly because q.shape[-1] == 1 (heads == 1):
    pre = (v[:, None, :] * sh[None, :, :] * sq[:, None, :]
           + hbias[None, :, :])                             # (BT, 3, 96)

    # torch.norm(dim=2): rsqrt on EUP, epsilon guard against all-zero rows
    sqn = jnp.sum(pre * pre, axis=2, keepdims=True)
    natt = pre * jax.lax.rsqrt(jnp.maximum(sqn, 1e-30))
    # softmax over dim=2; denominator via approx reciprocal (EUP slot)
    m = jnp.max(natt, axis=2, keepdims=True)
    e = jnp.exp(natt - m)
    att = e * pl.reciprocal(jnp.sum(e, axis=2, keepdims=True), approx=True)

    satt = jnp.sum(att, axis=1)                             # (BT, 96) sum_c att[b,c,j]
    scale0 = svb * satt[:, 0:1]                             # (BT, 1)
    extra = svb * sq * (satt[:, 1:2] + satt[:, 2:3])        # (BT, 1)

    # --- reg MLP (pool matmul + BatchNorm scale folded into PW1/w1_colsum) -----
    # (AdaptiveAvgPool1d(logits0) + extra) @ (bn_scale*W1) + b1
    #   = scale0 * (A @ PW1) + extra * colsum(bn_scale*W1) + b1
    # TODO(synk): Dropout(0.1) layers are identity here (inference mode).
    h1 = jnp.maximum(
        scale0 * jnp.dot(a_ref[...], pw1_ref[...],
                         preferred_element_type=jnp.float32)
        + extra * w1cs_ref[...] + b1_ref[...], 0.0)         # (BT, 1024)
    h2 = jnp.maximum(
        jnp.dot(h1.astype(jnp.bfloat16), w2_ref[...],
                preferred_element_type=jnp.float32) + b2_ref[...], 0.0)
    # 512 -> 1: VPU multiply + lane reduce (no N=1 MXU matmul)
    out_ref[...] = (jnp.sum(h2 * w3_ref[...], axis=-1, keepdims=True)
                    + b3_ref[...])


def net_reg_forward(A, B, params, *, max_batch_tile=1024):
    bs = A.shape[0]
    assert A.shape[-1] == 1, "kernel assumes q.shape[-1] == 1 (heads == 1)"
    k = B.shape[-1] // FEATURE_DIM
    # F.avg_pool1d(B, k)[:, :96, 0] done in XLA -> lane-dense (bs, 96) input.
    v = jnp.mean(B[:, :FEATURE_DIM, :k], axis=-1)            # (bs, 96) f32
    a2d = A.reshape(bs, -1)                                  # (bs, M) f32
    M = a2d.shape[1]
    # Exact f32 row sums computed once in XLA, packed alongside v.
    sq = jnp.sum(a2d, axis=1, keepdims=True)                 # (bs, 1)
    svb = jnp.sum(v, axis=1, keepdims=True)                  # (bs, 1)
    vq = jnp.concatenate([v, sq, svb], axis=1)               # (bs, 98) f32
    a_bf16 = a2d.astype(jnp.bfloat16)                        # halves A's DMA

    hmat2d = params["h_mat"][0, :, :, 0]                     # (3, 96)
    sh2d = jnp.sum(hmat2d, axis=1, keepdims=True)            # (3, 1) hoisted
    hbias2d = params["h_bias"][0, :, :, 0]                   # (3, 1)

    # Fold BatchNorm1d inference scale and the adaptive-pool matrix into W1.
    bn_scale = 1.0 / np.sqrt(1.0 + 1e-5)
    w1s = params["W1"] * bn_scale                            # (96, 1024) f32
    pool_mat = jnp.asarray(adaptive_pool_matrix(M, FEATURE_DIM))   # (M, 96)
    pw1 = jnp.dot(pool_mat, w1s).astype(jnp.bfloat16)        # (M, 1024) bf16
    w1cs = jnp.sum(w1s, axis=0, keepdims=True)               # (1, 1024) f32
    b1 = params["b1"].astype(jnp.float32)
    w2 = params["W2"].astype(jnp.bfloat16)                   # (1024, 512) bf16
    b2 = params["b2"].astype(jnp.float32)
    w3 = params["W3"].reshape(1, -1).astype(jnp.float32)     # (1, 512) row
    b3 = params["b3"].astype(jnp.float32)                    # (1, 1)

    # --- batch tiling: multiple of 8, big tiles, and >=2 grid steps when
    #     possible so v7x's second TensorCore isn't idle ------------------------
    padded8 = ((bs + 7) // 8) * 8
    BT = min(max_batch_tile, padded8)
    if BT == padded8 and padded8 >= 16:
        BT = ((padded8 // 2 + 7) // 8) * 8
    padded = ((bs + BT - 1) // BT) * BT
    if padded != bs:
        pad = padded - bs
        vq = jnp.pad(vq, ((0, pad), (0, 0)))
        a_bf16 = jnp.pad(a_bf16, ((0, pad), (0, 0)))

    def batch_spec(cols):
        return pl.BlockSpec((BT, cols), lambda i: (i, 0))

    def const_spec(shape):
        return pl.BlockSpec(shape, lambda i: (0, 0))

    out = pl.pallas_call(
        _net_reg_kernel,
        out_shape=jax.ShapeDtypeStruct((padded, 1), jnp.float32),
        grid=(padded // BT,),
        in_specs=[
            batch_spec(VQ_COLS),                # vq = [v | sq | svb] (per tile)
            batch_spec(M),                      # A flattened, bf16 (per tile)
            const_spec((3, 1)),                 # sum_x h_mat   (resident)
            const_spec((3, 1)),                 # h_bias        (resident)
            const_spec((M, 1024)),              # PW1 bf16 (pool+BN folded W1)
            const_spec((1, 1024)),              # colsum(bn_scale*W1)
            const_spec((1, 1024)),              # b1
            const_spec((1024, 512)),            # W2 bf16
            const_spec((1, 512)),               # b2
            const_spec((1, 512)),               # W3 row
            const_spec((1, 1)),                 # b3
        ],
        out_specs=pl.BlockSpec((BT, 1), lambda i: (i, 0)),
        compiler_params=pltpu.CompilerParams(
            dimension_semantics=("parallel",),
            vmem_limit_bytes=48 * 1024 * 1024),
    )(vq, a_bf16, sh2d, hbias2d, pw1, w1cs, b1, w2, b2, w3, b3)
    return out[:bs]


def reference_forward(A, B, p):
    """Pure-JAX transcription of net_reg.forward (inference mode), for checking."""
    k = B.shape[-1] // FEATURE_DIM
    Bp = jnp.mean(B[:, :, :k], axis=-1, keepdims=True)  # avg_pool1d -> take window 0
    Bp = Bp[:, :FEATURE_DIM, :]
    q, v = A, Bp
    heads = 1
    a = v.reshape(v.shape[0], heads, v.shape[1] // heads, -1)
    b = q.reshape(q.shape[0], heads, q.shape[-1] // heads, -1)
    a1 = jnp.swapaxes(a, 2, 3)
    b1 = jnp.swapaxes(b, 2, 3)
    att = jnp.einsum("bijk,hcxk,bqiv->bjck", a, p["h_mat"], b)
    att = jnp.swapaxes(att, 1, 2) + p["h_bias"]
    natt = att / jnp.linalg.norm(att, axis=2, keepdims=True)
    att = jax.nn.softmax(natt, axis=2)

    def pool(x):  # AdaptiveAvgPool1d(96) on (bs, C, L)
        P = jnp.asarray(adaptive_pool_matrix(x.shape[-1], FEATURE_DIM))
        return x @ P

    logits = jnp.einsum("bikj,bhi,bqvk->bivq", a1, att[:, :, 0, :], b1)
    logits = jnp.swapaxes(pool(logits[..., 0]), 1, 2)
    for i in (1, 2):
        li = jnp.einsum("bihc,bxv,bqkv->bi", a1, att[:, :, i, :], b1)
        li = jnp.swapaxes(pool(li[..., None]), 1, 2)
        logits = logits + li
    logits = logits / jnp.sqrt(1.0 + 1e-5)          # BatchNorm1d inference defaults
    x = logits[..., 0]
    h1 = jax.nn.relu(x @ p["W1"] + p["b1"])
    h2 = jax.nn.relu(h1 @ p["W2"] + p["b2"])
    return h2 @ p["W3"] + p["b3"]


def init_params(key):
    ks = jax.random.split(key, 8)
    return {
        "h_mat": jax.random.normal(ks[0], (1, 3, FEATURE_DIM, 1), jnp.float32),
        "h_bias": jax.random.normal(ks[1], (1, 3, 1, 1), jnp.float32),
        "W1": jax.random.normal(ks[2], (96, 1024), jnp.float32) * 0.05,
        "b1": jax.random.normal(ks[3], (1, 1024), jnp.float32) * 0.05,
        "W2": jax.random.normal(ks[4], (1024, 512), jnp.float32) * 0.05,
        "b2": jax.random.normal(ks[5], (1, 512), jnp.float32) * 0.05,
        "W3": jax.random.normal(ks[6], (512, 1), jnp.float32) * 0.05,
        "b3": jax.random.normal(ks[7], (1, 1), jnp.float32) * 0.05,
    }


if __name__ == "__main__":
    key = jax.random.PRNGKey(0)
    kA, kB, kp = jax.random.split(key, 3)
    bs, M, CB, LB = 2, 192, 100, 192          # A: (bs, M, 1), B: (bs, CB, LB)
    A = jax.random.normal(kA, (bs, M, 1), jnp.float32)
    B = jax.random.normal(kB, (bs, CB, LB), jnp.float32)
    params = init_params(kp)

    out = net_reg_forward(A, B, params)
    out = jax.block_until_ready(out)
    assert out.shape == (bs, 1)

    ref = reference_forward(A, B, params)
    # tolerance accommodates bf16 A/PW1/W2 + approx reciprocal vs. f32 reference
    np.testing.assert_allclose(np.asarray(out), np.asarray(ref), rtol=5e-2, atol=5e-2)
    print("KERNEL_OK")
</pallas_src>

<mosaic_0001>
module attributes {stable_mosaic.version = 11 : i64} {
  func.func @_net_reg_kernel(%arg0: i32, %arg1: memref<8x98xf32, #tpu.memory_space<vmem>>, %arg2: memref<8x192xbf16, #tpu.memory_space<vmem>>, %arg3: memref<3x1xf32, #tpu.memory_space<vmem>>, %arg4: memref<3x1xf32, #tpu.memory_space<vmem>>, %arg5: memref<192x1024xbf16, #tpu.memory_space<vmem>>, %arg6: memref<1x1024xf32, #tpu.memory_space<vmem>>, %arg7: memref<1x1024xf32, #tpu.memory_space<vmem>>, %arg8: memref<1024x512xbf16, #tpu.memory_space<vmem>>, %arg9: memref<1x512xf32, #tpu.memory_space<vmem>>, %arg10: memref<1x512xf32, #tpu.memory_space<vmem>>, %arg11: memref<1x1xf32, #tpu.memory_space<vmem>>, %arg12: memref<8x1xf32, #tpu.memory_space<vmem>>) attributes {dimension_semantics = [#tpu.dimension_semantics<parallel>], iteration_bounds = array<i64: 1>, scalar_prefetch = 0 : i64, scratch_operands = 0 : i64, tpu.core_type = #tpu.core_type<tc>, window_params = [{transform_indices = @transform_0, window_bounds = array<i64: 8, 98>}, {transform_indices = @transform_1, window_bounds = array<i64: 8, 192>}, {pipeline_mode = #tpu.pipeline_mode<synchronous>, transform_indices = @transform_2, window_bounds = array<i64: 3, 1>}, {pipeline_mode = #tpu.pipeline_mode<synchronous>, transform_indices = @transform_3, window_bounds = array<i64: 3, 1>}, {pipeline_mode = #tpu.pipeline_mode<synchronous>, transform_indices = @transform_4, window_bounds = array<i64: 192, 1024>}, {pipeline_mode = #tpu.pipeline_mode<synchronous>, transform_indices = @transform_5, window_bounds = array<i64: 1, 1024>}, {pipeline_mode = #tpu.pipeline_mode<synchronous>, transform_indices = @transform_6, window_bounds = array<i64: 1, 1024>}, {pipeline_mode = #tpu.pipeline_mode<synchronous>, transform_indices = @transform_7, window_bounds = array<i64: 1024, 512>}, {pipeline_mode = #tpu.pipeline_mode<synchronous>, transform_indices = @transform_8, window_bounds = array<i64: 1, 512>}, {pipeline_mode = #tpu.pipeline_mode<synchronous>, transform_indices = @transform_9, window_bounds = array<i64: 1, 512>}, {pipeline_mode = #tpu.pipeline_mode<synchronous>, transform_indices = @transform_10, window_bounds = array<i64: 1, 1>}, {transform_indices = @transform_11, window_bounds = array<i64: 8, 1>}]} {
    %c0 = arith.constant 0 : index
    %c0_0 = arith.constant 0 : index
    %0 = vector.load %arg1[%c0, %c0_0] : memref<8x98xf32, #tpu.memory_space<vmem>>, vector<8x98xf32>
    %1 = vector.extract_strided_slice %0 {offsets = [0, 0], sizes = [8, 96], strides = [1, 1]} : vector<8x98xf32> to vector<8x96xf32>
    %2 = vector.extract_strided_slice %0 {offsets = [0, 96], sizes = [8, 1], strides = [1, 1]} : vector<8x98xf32> to vector<8x1xf32>
    %3 = vector.extract_strided_slice %0 {offsets = [0, 97], sizes = [8, 1], strides = [1, 1]} : vector<8x98xf32> to vector<8x1xf32>
    %c0_1 = arith.constant 0 : index
    %c0_2 = arith.constant 0 : index
    %4 = vector.load %arg3[%c0_1, %c0_2] : memref<3x1xf32, #tpu.memory_space<vmem>>, vector<3x1xf32>
    %c0_3 = arith.constant 0 : index
    %c0_4 = arith.constant 0 : index
    %5 = vector.load %arg4[%c0_3, %c0_4] : memref<3x1xf32, #tpu.memory_space<vmem>>, vector<3x1xf32>
    %6 = vector.shape_cast %1 : vector<8x96xf32> to vector<8x1x96xf32>
    %7 = vector.shape_cast %4 : vector<3x1xf32> to vector<1x3x1xf32>
    %8 = vector.broadcast %6 : vector<8x1x96xf32> to vector<8x3x96xf32>
    %9 = vector.broadcast %7 : vector<1x3x1xf32> to vector<8x3x96xf32>
    %10 = arith.mulf %8, %9 : vector<8x3x96xf32>
    %11 = vector.shape_cast %2 : vector<8x1xf32> to vector<8x1x1xf32>
    %12 = vector.broadcast %11 : vector<8x1x1xf32> to vector<8x3x96xf32>
    %13 = arith.mulf %10, %12 : vector<8x3x96xf32>
    %14 = vector.shape_cast %5 : vector<3x1xf32> to vector<1x3x1xf32>
    %15 = vector.broadcast %14 : vector<1x3x1xf32> to vector<8x3x96xf32>
    %16 = arith.addf %13, %15 : vector<8x3x96xf32>
    %17 = arith.mulf %16, %16 : vector<8x3x96xf32>
    %cst = arith.constant dense<0.000000e+00> : vector<8x3xf32>
    %18 = vector.multi_reduction <add>, %17, %cst [2] : vector<8x3x96xf32> to vector<8x3xf32>
    %19 = vector.shape_cast %18 : vector<8x3xf32> to vector<8x3x1xf32>
    %cst_5 = arith.constant 1.000000e-30 : f32
    %20 = vector.broadcast %cst_5 : f32 to vector<8x3x1xf32>
    %21 = arith.maximumf %19, %20 : vector<8x3x1xf32>
    %22 = math.rsqrt %21 : vector<8x3x1xf32>
    %23 = vector.broadcast %22 : vector<8x3x1xf32> to vector<8x3x96xf32>
    %24 = arith.mulf %16, %23 : vector<8x3x96xf32>
    %cst_6 = arith.constant dense<0xFF800000> : vector<8x3xf32>
    %25 = vector.multi_reduction <maximumf>, %24, %cst_6 [2] : vector<8x3x96xf32> to vector<8x3xf32>
    %26 = vector.shape_cast %25 : vector<8x3xf32> to vector<8x3x1xf32>
    %27 = vector.broadcast %26 : vector<8x3x1xf32> to vector<8x3x96xf32>
    %28 = arith.subf %24, %27 : vector<8x3x96xf32>
    %29 = math.exp %28 : vector<8x3x96xf32>
    %cst_7 = arith.constant dense<0.000000e+00> : vector<8x3xf32>
    %30 = vector.multi_reduction <add>, %29, %cst_7 [2] : vector<8x3x96xf32> to vector<8x3xf32>
    %31 = vector.shape_cast %30 : vector<8x3xf32> to vector<8x3x1xf32>
    %32 = tpu.reciprocal %31 {approx = true} : vector<8x3x1xf32> -> vector<8x3x1xf32>
    %33 = vector.broadcast %32 : vector<8x3x1xf32> to vector<8x3x96xf32>
    %34 = arith.mulf %29, %33 : vector<8x3x96xf32>
    %cst_8 = arith.constant dense<0.000000e+00> : vector<8x96xf32>
    %35 = vector.multi_reduction <add>, %34, %cst_8 [1] : vector<8x3x96xf32> to vector<8x96xf32>
    %36 = vector.extract_strided_slice %35 {offsets = [0, 0], sizes = [8, 1], strides = [1, 1]} : vector<8x96xf32> to vector<8x1xf32>
    %37 = arith.mulf %3, %36 : vector<8x1xf32>
    %38 = arith.mulf %3, %2 : vector<8x1xf32>
    %39 = vector.extract_strided_slice %35 {offsets = [0, 1], sizes = [8, 1], strides = [1, 1]} : vector<8x96xf32> to vector<8x1xf32>
    %40 = vector.extract_strided_slice %35 {offsets = [0, 2], sizes = [8, 1], strides = [1, 1]} : vector<8x96xf32> to vector<8x1xf32>
    %41 = arith.addf %39, %40 : vector<8x1xf32>
    %42 = arith.mulf %38, %41 : vector<8x1xf32>
    %c0_9 = arith.constant 0 : index
    %c0_10 = arith.constant 0 : index
    %43 = vector.load %arg2[%c0_9, %c0_10] : memref<8x192xbf16, #tpu.memory_space<vmem>>, vector<8x192xbf16>
    %c0_11 = arith.constant 0 : index
    %c0_12 = arith.constant 0 : index
    %44 = vector.load %arg5[%c0_11, %c0_12] : memref<192x1024xbf16, #tpu.memory_space<vmem>>, vector<192x1024xbf16>
    %cst_13 = arith.constant dense<0.000000e+00> : vector<8x1024xf32>
    %45 = tpu.matmul %43, %44, %cst_13 {dimension_numbers = #tpu.dot_dimension_numbers<[1], [0], [0], [1], [0, 0, 1, 1], [], []>} : vector<8x192xbf16>, vector<192x1024xbf16>, vector<8x1024xf32> -> vector<8x1024xf32>
    %46 = vector.broadcast %37 : vector<8x1xf32> to vector<8x1024xf32>
    %47 = arith.mulf %46, %45 : vector<8x1024xf32>
    %c0_14 = arith.constant 0 : index
    %c0_15 = arith.constant 0 : index
    %48 = vector.load %arg6[%c0_14, %c0_15] : memref<1x1024xf32, #tpu.memory_space<vmem>>, vector<1x1024xf32>
    %49 = vector.broadcast %42 : vector<8x1xf32> to vector<8x1024xf32>
    %50 = vector.broadcast %48 : vector<1x1024xf32> to vector<8x1024xf32>
    %51 = arith.mulf %49, %50 : vector<8x1024xf32>
    %52 = arith.addf %47, %51 : vector<8x1024xf32>
    %c0_16 = arith.constant 0 : index
    %c0_17 = arith.constant 0 : index
    %53 = vector.load %arg7[%c0_16, %c0_17] : memref<1x1024xf32, #tpu.memory_space<vmem>>, vector<1x1024xf32>
    %54 = vector.broadcast %53 : vector<1x1024xf32> to vector<8x1024xf32>
    %55 = arith.addf %52, %54 : vector<8x1024xf32>
    %cst_18 = arith.constant 0.000000e+00 : f32
    %56 = vector.broadcast %cst_18 : f32 to vector<8x1024xf32>
    %57 = arith.maximumf %55, %56 : vector<8x1024xf32>
    %58 = arith.truncf %57 : vector<8x1024xf32> to vector<8x1024xbf16>
    %c0_19 = arith.constant 0 : index
    %c0_20 = arith.constant 0 : index
    %59 = vector.load %arg8[%c0_19, %c0_20] : memref<1024x512xbf16, #tpu.memory_space<vmem>>, vector<1024x512xbf16>
    %cst_21 = arith.constant dense<0.000000e+00> : vector<8x512xf32>
    %60 = tpu.matmul %58, %59, %cst_21 {dimension_numbers = #tpu.dot_dimension_numbers<[1], [0], [0], [1], [0, 0, 1, 1], [], []>} : vector<8x1024xbf16>, vector<1024x512xbf16>, vector<8x512xf32> -> vector<8x512xf32>
    %c0_22 = arith.constant 0 : index
    %c0_23 = arith.constant 0 : index
    %61 = vector.load %arg9[%c0_22, %c0_23] : memref<1x512xf32, #tpu.memory_space<vmem>>, vector<1x512xf32>
    %62 = vector.broadcast %61 : vector<1x512xf32> to vector<8x512xf32>
    %63 = arith.addf %60, %62 : vector<8x512xf32>
    %cst_24 = arith.constant 0.000000e+00 : f32
    %64 = vector.broadcast %cst_24 : f32 to vector<8x512xf32>
    %65 = arith.maximumf %63, %64 : vector<8x512xf32>
    %c0_25 = arith.constant 0 : index
    %c0_26 = arith.constant 0 : index
    %66 = vector.load %arg10[%c0_25, %c0_26] : memref<1x512xf32, #tpu.memory_space<vmem>>, vector<1x512xf32>
    %67 = vector.broadcast %66 : vector<1x512xf32> to vector<8x512xf32>
    %68 = arith.mulf %65, %67 : vector<8x512xf32>
    %cst_27 = arith.constant dense<0.000000e+00> : vector<8xf32>
    %69 = vector.multi_reduction <add>, %68, %cst_27 [1] : vector<8x512xf32> to vector<8xf32>
    %70 = vector.shape_cast %69 : vector<8xf32> to vector<8x1xf32>
    %c0_28 = arith.constant 0 : index
    %c0_29 = arith.constant 0 : index
    %71 = vector.load %arg11[%c0_28, %c0_29] : memref<1x1xf32, #tpu.memory_space<vmem>>, vector<1x1xf32>
    %72 = vector.broadcast %71 : vector<1x1xf32> to vector<8x1xf32>
    %73 = arith.addf %70, %72 : vector<8x1xf32>
    %c0_30 = arith.constant 0 : index
    %c0_31 = arith.constant 0 : index
    %74 = vector.load %arg12[%c0_30, %c0_31] : memref<8x1xf32, #tpu.memory_space<vmem>>, vector<8x1xf32>
    tpu.vector_store %arg12[%c0_30, %c0_31], %73 {strides = array<i32>} : memref<8x1xf32, #tpu.memory_space<vmem>>, vector<8x1xf32>,
    return
  }
  func.func @transform_0(%arg0: i32) -> (i32, i32) {
    %c0_i32 = arith.constant 0 : i32
    %c0_i32_0 = arith.constant 0 : i32
    return %arg0, %c0_i32 : i32, i32
  }
  func.func @transform_1(%arg0: i32) -> (i32, i32) {
    %c0_i32 = arith.constant 0 : i32
    %c0_i32_0 = arith.constant 0 : i32
    return %arg0, %c0_i32 : i32, i32
  }
  func.func @transform_2(%arg0: i32) -> (i32, i32) {
    %c0_i32 = arith.constant 0 : i32
    %c0_i32_0 = arith.constant 0 : i32
    %c0_i32_1 = arith.constant 0 : i32
    return %c0_i32, %c0_i32_0 : i32, i32
  }
  func.func @transform_3(%arg0: i32) -> (i32, i32) {
    %c0_i32 = arith.constant 0 : i32
    %c0_i32_0 = arith.constant 0 : i32
    %c0_i32_1 = arith.constant 0 : i32
    return %c0_i32, %c0_i32_0 : i32, i32
  }
  func.func @transform_4(%arg0: i32) -> (i32, i32) {
    %c0_i32 = arith.constant 0 : i32
    %c0_i32_0 = arith.constant 0 : i32
    %c0_i32_1 = arith.constant 0 : i32
    return %c0_i32, %c0_i32_0 : i32, i32
  }
  func.func @transform_5(%arg0: i32) -> (i32, i32) {
    %c0_i32 = arith.constant 0 : i32
    %c0_i32_0 = arith.constant 0 : i32
    %c0_i32_1 = arith.constant 0 : i32
    return %c0_i32, %c0_i32_0 : i32, i32
  }
  func.func @transform_6(%arg0: i32) -> (i32, i32) {
    %c0_i32 = arith.constant 0 : i32
    %c0_i32_0 = arith.constant 0 : i32
    %c0_i32_1 = arith.constant 0 : i32
    return %c0_i32, %c0_i32_0 : i32, i32
  }
  func.func @transform_7(%arg0: i32) -> (i32, i32) {
    %c0_i32 = arith.constant 0 : i32
    %c0_i32_0 = arith.constant 0 : i32
    %c0_i32_1 = arith.constant 0 : i32
    return %c0_i32, %c0_i32_0 : i32, i32
  }
  func.func @transform_8(%arg0: i32) -> (i32, i32) {
    %c0_i32 = arith.constant 0 : i32
    %c0_i32_0 = arith.constant 0 : i32
    %c0_i32_1 = arith.constant 0 : i32
    return %c0_i32, %c0_i32_0 : i32, i32
  }
  func.func @transform_9(%arg0: i32) -> (i32, i32) {
    %c0_i32 = arith.constant 0 : i32
    %c0_i32_0 = arith.constant 0 : i32
    %c0_i32_1 = arith.constant 0 : i32
    return %c0_i32, %c0_i32_0 : i32, i32
  }
  func.func @transform_10(%arg0: i32) -> (i32, i32) {
    %c0_i32 = arith.constant 0 : i32
    %c0_i32_0 = arith.constant 0 : i32
    %c0_i32_1 = arith.constant 0 : i32
    return %c0_i32, %c0_i32_0 : i32, i32
  }
  func.func @transform_11(%arg0: i32) -> (i32, i32) {
    %c0_i32 = arith.constant 0 : i32
    %c0_i32_0 = arith.constant 0 : i32
    return %arg0, %c0_i32 : i32, i32
  }
}

</mosaic_0001>

<bundles_post_ra>
// kernel: tpu_custom_call.1
= control target key start
LH: loop header
LB: loop body
LE: loop exit
PB: predicated region body
PF: predicated region fallthrough
CT: control target
= control target key end

     0   :  { %s4625_s0 = inlined_call_operand.vmem [shape: f32[8,98], index: 0, kind: input, shape index: {}]   ;;  %s4626_s1 = inlined_call_operand.vmem [shape: bf16[8,192], index: 1, kind: input, shape index: {}]   ;;  %s4627_s2 = inlined_call_operand.vmem [shape: f32[3,1], index: 2, kind: input, shape index: {}]   ;;  %s4628_s3 = inlined_call_operand.vmem [shape: f32[3,1], index: 3, kind: input, shape index: {}]   ;;  %s4629_s4 = inlined_call_operand.hbm [shape: bf16[192,1024], index: 4, kind: input, shape index: {}]   ;;  %s4630_s5 = inlined_call_operand.vmem [shape: f32[1,1024], index: 5, kind: input, shape index: {}]   ;;  %s4631_s6 = inlined_call_operand.vmem [shape: f32[1,1024], index: 6, kind: input, shape index: {}]   ;;  %s4632_s7 = inlined_call_operand.hbm [shape: bf16[1024,512], index: 7, kind: input, shape index: {}]   ;;  %s4633_s8 = inlined_call_operand.vmem [shape: f32[1,512], index: 8, kind: input, shape index: {}]   ;;  %s4634_s9 = inlined_call_operand.vmem [shape: f32[1,512], index: 9, kind: input, shape index: {}]   ;;  %s4635_s10 = inlined_call_operand.<no memory space> [shape: f32[1,1], index: 10, kind: input, shape index: {}]   ;;  %s4636_s11 = inlined_call_operand.vmem [shape: f32[8,1], index: 11, kind: output, shape index: {}]  }
   0x1   :  { %v16_v0 = vstv %s4635_s10 }
   0x2   :  { %17 = vst [vmem:[#allocation2] sm:$0x1] %v16_v0 }
   0x3   :  { %18 = vsyncpa [#allocation4], 0 }
   0x4   :  { %19 = vsyncpa [#allocation6], 0  ;;  %s4239_s19 = smov [#allocation3]   ;;  %s4191_s23 = scalar_lea.hbm %s4629_s4, 12288 }
   0x5   :  { %s33_s20 = sshll.u32 %s4239_s19, 4  ;;  %p4192_p0 = scmp.ne.s32.totalorder %s4629_s4, %s4191_s23  ;;  %s34_s20 = int_to_ptr.vmem [resolvable:$true] %s33_s20 }
   0x6   :  { %p4195_p1 = scmp.lt.u32.totalorder %s4191_s23, %s4629_s4 }
   0x8   :  { %p4197_p2 = pnand %p4195_p1, %p4192_p0 }
   0xa   :  { %4200 = shalt.err (!%p4197_p2)
}
   0xb   :  { %s4201_s10 = scalar_lea.vmem %s34_s20, 12288  ;;  %p4206_p4 = scmp.lt.s32.totalorder %s34_s20, %s34_s20 }
   0xc   :  { %p4202_p3 = scmp.ne.s32.totalorder %s34_s20, %s4201_s10  ;;  %p4207_p5 = scmp.lt.s32.totalorder %s4201_s10, %s4201_s10 }
   0xe   :  { %p4208_p6 = por %p4207_p5, %p4206_p4 }
  0x10   :  { %p4209_p7 = pnand %p4208_p6, %p4202_p3 }
  0x12   :  { %4212 = shalt.err (!%p4209_p7)
}
  0x13   :  { %s4240_s28 = smov 512   ;;  %s4241_s29 = smov 32  }
  0x14   :  { %39 = dma.hbm_to_vmem [thread:$0]  %s4629_s4, 12288, %s34_s20, [#allocation4], %s4240_s28, %s4240_s28, %s4241_s29  }
  0x15   :  { %s4242_s13 = smov [#allocation5]   ;;  %s4213_s17 = scalar_lea.hbm %s4632_s7, 32768 }
  0x16   :  { %s49_s14 = sshll.u32 %s4242_s13, 4  ;;  %p4214_p8 = scmp.ne.s32.totalorder %s4632_s7, %s4213_s17  ;;  %s50_s14 = int_to_ptr.vmem [resolvable:$true] %s49_s14 }
  0x17   :  { %p4217_p9 = scmp.lt.u32.totalorder %s4213_s17, %s4632_s7 }
  0x19   :  { %p4219_p10 = pnand %p4217_p9, %p4214_p8 }
  0x1b   :  { %4222 = shalt.err (!%p4219_p10)
}
  0x1c   :  { %s4223_s23 = scalar_lea.vmem %s50_s14, 32768  ;;  %p4228_p12 = scmp.lt.s32.totalorder %s50_s14, %s50_s14 }
  0x1d   :  { %p4224_p11 = scmp.ne.s32.totalorder %s50_s14, %s4223_s23  ;;  %p4229_p13 = scmp.lt.s32.totalorder %s4223_s23, %s4223_s23 }
  0x1f   :  { %p4230_p0 = por %p4229_p13, %p4228_p12 }
  0x21   :  { %p4231_p1 = pnand %p4230_p0, %p4224_p11 }
  0x23   :  { %4234 = shalt.err (!%p4231_p1)
}
  0x24   :  { %s4243_s4 = smov 256   ;;  %s4244_s20 = smov 16  }
  0x25   :  { %55 = dma.hbm_to_vmem [thread:$0]  %s4632_s7, 32768, %s50_s14, [#allocation6], %s4243_s4, %s4243_s4, %s4244_s20  }
  0x26   :  { %4235 = dma.done.wait [#allocation4], 12288  }
  0x27   :  { %4236 = vsyncadd [#allocation4], 4294955008 }
  0x28   :  { %4237 = dma.done.wait [#allocation6], 32768  }
  0x29   :  { %4238 = vsyncadd [#allocation6], 4294934528  ;;  %v77_v1 = vlaneseq  ;;  %v4245_v2 = vmov 0   ;;  %v4246_v3 = vmov 96   ;;  %v4247_v4 = vmov 1966171168  }
  0x2a   :  { %3748 = vset.pattern.permute.xlu0 %v4245_v2  ;;  %3749 = vset.pattern.permute.xlu1 %v4246_v3  ;;  %v75_v5 = vunpack.c.l.s4 %v4247_v4  ;;  %v70_v9 = vld [vmem:[%s4627_s2] sm:$0x7]  ;;  %vm236_vm0 = vcmask 780288   ;;  %vm1100_vm1 = vcmask 523264   ;;  %vm437_vm2 = vcmask 1041409   ;;  %s4250_s13 = smov 1  }
  0x2b   :  { %v4340_v6 = vshrl.u32 %v77_v1, 7  ;;  %v69_v10 = vld [vmem:[%s4625_s0] sm:$0xff]  ;;  %164 = vperm.xlu0 %3748, %v70_v9   ;;  %vm439_vm3 = vcmask 1042434   ;;  %vm441_vm4 = vcmask 1043459   ;;  %vm443_vm5 = vcmask 1044484   ;;  %s4251_s14 = smov 97  }
  0x2c   :  { %v76_v7 = vunpack.c.0.s8 %v75_v5  ;;  %v73_v13 = vcombine.high %v69_v10, %v69_v10  ;;  %v71_v23 = vld [vmem:[%s4628_s3] sm:$0x7]  ;;  %vm445_vm6 = vcmask 1045509   ;;  %vm447_vm7 = vcmask 1046534  }
  0x2d   :  { %v4350_v12 = vsub.s32 0, %v4340_v6  ;;  %vm449_vm8 = vcmask 1047559   ;;  %vm3339_vm9 = vcmask 7168  }
  0x2e   :  { %v79_v8 = vsub.s32 %v76_v7, %v4340_v6 }
  0x2f   :  { %3750 = vset.pattern.permute.xlu0 %v4246_v3 }
  0x30   :  { %v80_v11 = vrot.slane %v69_v10, %v79_v8  ;;  %v87_v16 = vrot.slane %v73_v13, %v79_v8 }
  0x32   :  { %v96_v14 = vrot.slane %v80_v11, %v79_v8  ;;  %v88_v15 = vcombine.high %v80_v11, %v80_v11  ;;  %v103_v22 = vrot.slane %v87_v16, %v79_v8  ;;  %v89_v27 = vcombine.high %v87_v16, %v87_v16 }
  0x34   :  { %v125_v17 = vrot.slane %v96_v14, %v4350_v12  ;;  %v118_v18 = vcombine.high %v96_v14, %v96_v14  ;;  %v110_v19 = vrot.slane %v88_v15, %v79_v8  ;;  %v141_v24 = vrot.slane %v103_v22, %v4350_v12 }
  0x35   :  { %v119_v26 = vcombine.high %v103_v22, %v103_v22  ;;  %v117_v30 = vrot.slane %v89_v27, %v79_v8 }
  0x36   :  { %176 = vperm.xlu1 %3749, %v125_v17   ;;  %v129_v20 = vrot.slane %v110_v19, %v4350_v12  ;;  %v133_v21 = vrot.slane %v118_v18, %v4350_v12  ;;  %v120_v25 = vcombine.high %v110_v19, %v110_v19 }
  0x37   :  { %v149_v29 = vrot.slane %v119_v26, %v4350_v12  ;;  %v145_v31 = vrot.slane %v117_v30, %v4350_v12  ;;  %v121_v32 = vcombine.high %v117_v30, %v117_v30 }
  0x38   :  { %180 = vperm.xlu0 %3750, %v129_v20   ;;  %v137_v28 = vrot.slane %v120_v25, %v4350_v12 }
  0x39   :  { %v153_v33 = vrot.slane %v121_v32, %v4350_v12 }
  0x3a   :  { %184 = vperm.xlu1 %3749, %v133_v21  }
  0x3c   :  { %3751 = vset.pattern.permute.xlu0 %v4245_v2 }
  0x3d   :  { %217 = vperm.xlu0 %3751, %v71_v23  }
  0x3e   :  { %192 = vperm.xlu1 %3749, %v141_v24  }
  0x41   :  { %3752 = vset.pattern.permute.xlu0 %v4246_v3 }
  0x42   :  { %188 = vperm.xlu1 %3749, %v137_v28   ;;  %200 = vperm.xlu0 %3752, %v149_v29  }
  0x46   :  { %196 = vperm.xlu1 %3749, %v145_v31  }
  0x4a   :  { %204 = vperm.xlu1 %3749, %v153_v33  }
  0xaa   :  { %v165_v34 = vpop.permute.xlu0 %164 }
  0xab   :  { %v167_v36 = vmul.f32 %v165_v34, %v125_v17  ;;  %v169_v38 = vmul.f32 %v165_v34, %v133_v21  ;;  %v168_v39 = vmul.f32 %v165_v34, %v129_v20  ;;  %v171_v45 = vmul.f32 %v165_v34, %v141_v24 }
  0xac   :  { %v170_v53 = vmul.f32 %v165_v34, %v137_v28  ;;  %v173_v54 = vmul.f32 %v165_v34, %v149_v29  ;;  %v172_v0 = vmul.f32 %v165_v34, %v145_v31  ;;  %v174_v10 = vmul.f32 %v165_v34, %v153_v33 }
  0xb5   :  { %v177_v35 = vpop.permute.xlu1 %176 }
  0xb6   :  { %v207_v42 = vmul.f32 %v177_v35, %v167_v36 }
  0xb7   :  { %v181_v37 = vpop.permute.xlu0 %180 }
  0xb8   :  { %v208_v43 = vmul.f32 %v181_v37, %v168_v39 }
  0xb9   :  { %v185_v40 = vpop.permute.xlu1 %184 }
  0xba   :  { %v209_v41 = vmul.f32 %v185_v40, %v169_v38 }
  0xbc   :  { %v218_v44 = vpop.permute.xlu0 %217 }
  0xbd   :  { %v193_v46 = vpop.permute.xlu1 %192  ;;  %v4363_v47 = vadd.f32 %v218_v44, %v207_v42  ;;  %v4365_v48 = vadd.f32 %v218_v44, %v208_v43  ;;  %v4367_v49 = vadd.f32 %v218_v44, %v209_v41 }
  0xbe   :  { %v211_v50 = vmul.f32 %v193_v46, %v171_v45 }
  0xbf   :  { %v228_v51 = vmul.f32 %v4363_v47, %v4363_v47  ;;  %v229_v52 = vmul.f32 %v4365_v48, %v4365_v48  ;;  %v230_v60 = vmul.f32 %v4367_v49, %v4367_v49 }
  0xc0   :  { %v4373_v55 = vadd.f32 %v218_v44, %v211_v50 }
  0xc1   :  { %v189_v56 = vpop.permute.xlu1 %188  ;;  %v201_v57 = vpop.permute.xlu0 %200  ;;  %v237_v58 = vsel %vm236_vm0, %v228_v51, 0.0  ;;  %v240_v59 = vsel %vm236_vm0, %v229_v52, 0.0  ;;  %v243_v3 = vsel %vm236_vm0, %v230_v60, 0.0 }
  0xc2   :  { %v210_v61 = vmul.f32 %v189_v56, %v170_v53  ;;  %v213_v62 = vmul.f32 %v201_v57, %v173_v54  ;;  %238 = vadd.xlane.f32.xlu0 %v237_v58  ;;  %241 = vadd.xlane.f32.xlu1 %v240_v59  ;;  %v232_v4 = vmul.f32 %v4373_v55, %v4373_v55 }
  0xc4   :  { %v4379_v63 = vadd.f32 %v218_v44, %v210_v61  ;;  %v4381_v1 = vadd.f32 %v218_v44, %v213_v62  ;;  %v249_v13 = vsel %vm236_vm0, %v232_v4, 0.0  ;;  %v518_v62 = vld [vmem:[#allocation3] sm:$0xff] }
  0xc5   :  { %v197_v2 = vpop.permute.xlu1 %196  ;;  %v526_v4 = vld [vmem:[#allocation3 + $0x40] sm:$0xff] }
  0xc6   :  { %v212_v5 = vmul.f32 %v197_v2, %v172_v0  ;;  %244 = vadd.xlane.f32.xlu0 %v243_v3  ;;  %v231_v7 = vmul.f32 %v4379_v63, %v4379_v63  ;;  %v234_v14 = vmul.f32 %v4381_v1, %v4381_v1  ;;  %v519_v0 = vld [vmem:[#allocation3 + $0x8] sm:$0xff] }
  0xc7   :  { %v523_v2 = vld [vmem:[#allocation3 + $0x28] sm:$0xff] }
  0xc8   :  { %v4388_v8 = vadd.f32 %v218_v44, %v212_v5  ;;  %v246_v9 = vsel %vm236_vm0, %v231_v7, 0.0  ;;  %v255_v19 = vsel %vm236_vm0, %v234_v14, 0.0  ;;  %v530_v5 = vld [vmem:[#allocation3 + $0x60] sm:$0xff]  ;;  %v3352_v7 = vcombine.high %v519_v0, %v523_v2 }
  0xc9   :  { %247 = vadd.xlane.f32.xlu1 %v246_v9  ;;  %v205_v11 = vpop.permute.xlu1 %204  ;;  %v3358_v9 = vcombine.high %v526_v4, %v530_v5 }
  0xca   :  { %v214_v15 = vmul.f32 %v205_v11, %v174_v10  ;;  %250 = vadd.xlane.f32.xlu0 %v249_v13  ;;  %v233_v16 = vmul.f32 %v4388_v8, %v4388_v8  ;;  %v527_v10 = vld [vmem:[#allocation3 + $0x48] sm:$0xff]  ;;  %v534_v13 = vld [vmem:[#allocation3 + $0x80] sm:$0xff]  ;;  %1145 = vmatprep.subr.bf16.mxu1 %v3352_v7 }
  0xcb   :  { %v531_v11 = vld [vmem:[#allocation3 + $0x68] sm:$0xff] }
  0xcc   :  { %v227_v17 = vadd.f32 %v218_v44, %v214_v15  ;;  %v252_v18 = vsel %vm236_vm0, %v233_v16, 0.0  ;;  %v3360_v14 = vcombine.high %v527_v10, %v531_v11  ;;  %v538_v15 = vld [vmem:[#allocation3 + $0xa0] sm:$0xff]  ;;  %v535_v16 = vld [vmem:[#allocation3 + $0x88] sm:$0xff] }
  0xcd   :  { %253 = vadd.xlane.f32.xlu1 %v252_v18  ;;  %v3357_v18 = vcombine.low %v526_v4, %v530_v5 }
  0xce   :  { %256 = vadd.xlane.f32.xlu0 %v255_v19  ;;  %v235_v20 = vmul.f32 %v227_v17, %v227_v17  ;;  %v3359_v19 = vcombine.low %v527_v10, %v531_v11 }
  0xd0   :  { %v258_v21 = vsel %vm236_vm0, %v235_v20, 0.0  ;;  %v3366_v20 = vcombine.high %v534_v13, %v538_v15 }
  0xd1   :  { %259 = vadd.xlane.f32.xlu1 %v258_v21 }
 0x14f   :  { %v239_v22 = vpop.xlane.xlu0 %238  ;;  %v242_v23 = vpop.xlane.xlu1 %241 }
 0x150   :  { %v261_v24 = vmax.f32 %v239_v22, 1e-30  ;;  %v262_v25 = vmax.f32 %v242_v23, 1e-30  ;;  %v542_v22 = vld [vmem:[#allocation3 + $0xc0] sm:$0xff] }
 0x151   :  { %v546_v23 = vld [vmem:[#allocation3 + $0xe0] sm:$0xff] }
 0x152   :  { %4142 = vrsqrt.f32 %v261_v24  ;;  %v543_v24 = vld [vmem:[#allocation3 + $0xc8] sm:$0xff] }
 0x153   :  { %4144 = vrsqrt.f32 %v262_v25  ;;  %v245_v26 = vpop.xlane.xlu0 %244  ;;  %v547_v25 = vld [vmem:[#allocation3 + $0xe8] sm:$0xff] }
 0x154   :  { %v263_v27 = vmax.f32 %v245_v26, 1e-30  ;;  %v3365_v26 = vcombine.low %v534_v13, %v538_v15 }
 0x156   :  { %4146 = vrsqrt.f32 %v263_v27  ;;  %v248_v28 = vpop.xlane.xlu1 %247 }
 0x157   :  { %v264_v29 = vmax.f32 %v248_v28, 1e-30  ;;  %v251_v30 = vpop.xlane.xlu0 %250  ;;  %v3374_v28 = vcombine.high %v542_v22, %v546_v23 }
 0x158   :  { %v265_v31 = vmax.f32 %v251_v30, 1e-30  ;;  %v550_v30 = vld [vmem:[#allocation3 + $0x100] sm:$0xff] }
 0x159   :  { %4148 = vrsqrt.f32 %v264_v29  ;;  %v3376_v29 = vcombine.high %v543_v24, %v547_v25 }
 0x15a   :  { %4150 = vrsqrt.f32 %v265_v31  ;;  %v254_v32 = vpop.xlane.xlu1 %253  ;;  %v554_v31 = vld [vmem:[#allocation3 + $0x120] sm:$0xff] }
 0x15b   :  { %v266_v33 = vmax.f32 %v254_v32, 1e-30  ;;  %v257_v34 = vpop.xlane.xlu0 %256  ;;  %v551_v32 = vld [vmem:[#allocation3 + $0x108] sm:$0xff] }
 0x15c   :  { %v4143_v35 = vpop.eup %4142  ;;  %v267_v36 = vmax.f32 %v257_v34, 1e-30  ;;  %v3373_v34 = vcombine.low %v542_v22, %v546_v23  ;;  %v563_v22 = vld [vmem:[#allocation3 + $0x168] sm:$0xff] }
 0x15d   :  { %v4145_v37 = vpop.eup %4144  ;;  %4152 = vrsqrt.f32 %v266_v33  ;;  %v4400_v38 = vmul.f32 %v4143_v35, %v4363_v47  ;;  %v555_v33 = vld [vmem:[#allocation3 + $0x128] sm:$0xff]  ;;  %v3375_v35 = vcombine.low %v543_v24, %v547_v25 }
 0x15e   :  { %4154 = vrsqrt.f32 %v267_v36  ;;  %v260_v39 = vpop.xlane.xlu1 %259  ;;  %v4405_v42 = vmul.f32 %v4145_v37, %v4365_v48  ;;  %v3382_v36 = vcombine.high %v550_v30, %v554_v31  ;;  %v3384_v37 = vcombine.high %v551_v32, %v555_v33 }
 0x15f   :  { %v268_v40 = vmax.f32 %v260_v39, 1e-30  ;;  %v285_v41 = vsel %vm236_vm0, %v4400_v38, -inf  ;;  %v3381_v39 = vcombine.low %v550_v30, %v554_v31  ;;  %v571_v30 = vld [vmem:[#allocation3 + $0x1a8] sm:$0xff] }
 0x160   :  { %v4147_v43 = vpop.eup %4146  ;;  %286 = vmax.xlane.f32.xlu0 %v285_v41  ;;  %v288_v46 = vsel %vm236_vm0, %v4405_v42, -inf }
 0x161   :  { %4156 = vrsqrt.f32 %v268_v40  ;;  %v4408_v44 = vmul.f32 %v4147_v43, %v4367_v49  ;;  %v3383_v40 = vcombine.low %v551_v32, %v555_v33 }
 0x163   :  { %v4149_v45 = vpop.eup %4148  ;;  %v291_v47 = vsel %vm236_vm0, %v4408_v44, -inf }
 0x164   :  { %v4151_v50 = vpop.eup %4150  ;;  %289 = vmax.xlane.f32.xlu0 %v288_v46  ;;  %292 = vmax.xlane.f32.xlu1 %v291_v47  ;;  %v4415_v51 = vmul.f32 %v4149_v45, %v4379_v63  ;;  %v522_v63 = vld [vmem:[#allocation3 + $0x20] sm:$0xff] }
 0x165   :  { %v4418_v48 = vmul.f32 %v4151_v50, %v4373_v55  ;;  %v3349_v3 = vcombine.low %v518_v62, %v522_v63 }
 0x166   :  { %v294_v49 = vsel %vm236_vm0, %v4415_v51, -inf }
 0x167   :  { %v4153_v52 = vpop.eup %4152  ;;  %v297_v53 = vsel %vm236_vm0, %v4418_v48, -inf }
 0x168   :  { %v4155_v54 = vpop.eup %4154  ;;  %298 = vmax.xlane.f32.xlu0 %v297_v53  ;;  %295 = vmax.xlane.f32.xlu1 %v294_v49  ;;  %v4425_v56 = vmul.f32 %v4153_v52, %v4388_v8  ;;  %v3351_v8 = vcombine.low %v519_v0, %v523_v2 }
 0x169   :  { %v4428_v57 = vmul.f32 %v4155_v54, %v4381_v1  ;;  %v3350_v1 = vcombine.high %v518_v62, %v522_v63 }
 0x16a   :  { %v300_v55 = vsel %vm236_vm0, %v4425_v56, -inf  ;;  %1146 = vmatpush1.bf16.msra.mxu1 %v3351_v8 }
 0x16b   :  { %v4157_v58 = vpop.eup %4156  ;;  %v303_v59 = vsel %vm236_vm0, %v4428_v57, -inf  ;;  %1104 = vmatprep.subr.bf16.mxu0 %v3350_v1  ;;  %1147 = vmatprep.subr.bf16.mxu1 %v3360_v14 }
 0x16c   :  { %304 = vmax.xlane.f32.xlu0 %v303_v59  ;;  %301 = vmax.xlane.f32.xlu1 %v300_v55  ;;  %v4434_v60 = vmul.f32 %v4157_v58, %v227_v17  ;;  %v539_v17 = vld [vmem:[#allocation3 + $0xa8] sm:$0xff] }
 0x16d   :  { %1105 = vmatpush1.bf16.msra.mxu0 %v3349_v3  ;;  %v3368_v21 = vcombine.high %v535_v16, %v539_v17  ;;  %v3367_v27 = vcombine.low %v535_v16, %v539_v17  ;;  %v558_v17 = vld [vmem:[#allocation3 + $0x140] sm:$0xff] }
 0x16e   :  { %v306_v61 = vsel %vm236_vm0, %v4434_v60, -inf  ;;  %1106 = vmatprep.subr.bf16.mxu0 %v3358_v9  ;;  %1148 = vmatpush1.bf16.msra.mxu1 %v3359_v19  ;;  %v559_v19 = vld [vmem:[#allocation3 + $0x148] sm:$0xff] }
 0x16f   :  { %1149 = vmatprep.subr.bf16.mxu1 %v3368_v21  ;;  %v3392_v24 = vcombine.high %v559_v19, %v563_v22  ;;  %v3391_v25 = vcombine.low %v559_v19, %v563_v22  ;;  %v524_v22 = vld [vmem:[#allocation3 + $0x30] sm:$0xff] }
 0x170   :  { %307 = vmax.xlane.f32.xlu1 %v306_v61 }
 0x171   :  { %1107 = vmatpush1.bf16.msra.mxu0 %v3357_v18  ;;  %v562_v18 = vld [vmem:[#allocation3 + $0x160] sm:$0xff] }
 0x172   :  { %1108 = vmatprep.subr.bf16.mxu0 %v3366_v20  ;;  %1150 = vmatpush1.bf16.msra.mxu1 %v3367_v27  ;;  %v3390_v21 = vcombine.high %v558_v17, %v562_v18  ;;  %v3389_v23 = vcombine.low %v558_v17, %v562_v18  ;;  %v570_v27 = vld [vmem:[#allocation3 + $0x1a0] sm:$0xff] }
 0x173   :  { %1151 = vmatprep.subr.bf16.mxu1 %v3376_v29 }
 0x175   :  { %1109 = vmatpush1.bf16.msra.mxu0 %v3365_v26  ;;  %v566_v26 = vld [vmem:[#allocation3 + $0x180] sm:$0xff] }
 0x176   :  { %1110 = vmatprep.subr.bf16.mxu0 %v3374_v28  ;;  %1152 = vmatpush1.bf16.msra.mxu1 %v3375_v35  ;;  %v567_v28 = vld [vmem:[#allocation3 + $0x188] sm:$0xff]  ;;  %v3398_v29 = vcombine.high %v566_v26, %v570_v27  ;;  %v3397_v31 = vcombine.low %v566_v26, %v570_v27  ;;  %v578_v35 = vld [vmem:[#allocation3 + $0x1e0] sm:$0xff]  ;;  %v525_v26 = vld [vmem:[#allocation3 + $0x38] sm:$0xff] }
 0x177   :  { %1153 = vmatprep.subr.bf16.mxu1 %v3384_v37  ;;  %v3400_v32 = vcombine.high %v567_v28, %v571_v30  ;;  %v3399_v33 = vcombine.low %v567_v28, %v571_v30 }
 0x179   :  { %1111 = vmatpush1.bf16.msra.mxu0 %v3373_v34  ;;  %v574_v34 = vld [vmem:[#allocation3 + $0x1c0] sm:$0xff] }
 0x17a   :  { %1112 = vmatprep.subr.bf16.mxu0 %v3382_v36  ;;  %1154 = vmatpush1.bf16.msra.mxu1 %v3383_v40  ;;  %v575_v36 = vld [vmem:[#allocation3 + $0x1c8] sm:$0xff]  ;;  %v3406_v37 = vcombine.high %v574_v34, %v578_v35  ;;  %v3405_v40 = vcombine.low %v574_v34, %v578_v35  ;;  %v533_v35 = vld [vmem:[#allocation3 + $0x78] sm:$0xff] }
 0x17b   :  { %1155 = vmatprep.subr.bf16.mxu1 %v3392_v24 }
 0x17d   :  { %1113 = vmatpush1.bf16.msra.mxu0 %v3381_v39  ;;  %v579_v39 = vld [vmem:[#allocation3 + $0x1e8] sm:$0xff] }
 0x17e   :  { %1114 = vmatprep.subr.bf16.mxu0 %v3390_v21  ;;  %1156 = vmatpush1.bf16.msra.mxu1 %v3391_v25  ;;  %v520_v21 = vld [vmem:[#allocation3 + $0x10] sm:$0xff]  ;;  %v521_v25 = vld [vmem:[#allocation3 + $0x18] sm:$0xff] }
 0x17f   :  { %1157 = vmatprep.subr.bf16.mxu1 %v3400_v32  ;;  %v3354_v24 = vcombine.high %v520_v21, %v524_v22  ;;  %v3356_v27 = vcombine.high %v521_v25, %v525_v26  ;;  %v3353_v28 = vcombine.low %v520_v21, %v524_v22  ;;  %v532_v32 = vld [vmem:[#allocation3 + $0x70] sm:$0xff] }
 0x181   :  { %1115 = vmatpush1.bf16.msra.mxu0 %v3389_v23 }
 0x182   :  { %1116 = vmatprep.subr.bf16.mxu0 %v3398_v29  ;;  %1158 = vmatpush1.bf16.msra.mxu1 %v3399_v33  ;;  %v3355_v29 = vcombine.low %v521_v25, %v525_v26  ;;  %v529_v33 = vld [vmem:[#allocation3 + $0x58] sm:$0xff] }
 0x183   :  { %v577_v25 = vld [vmem:[#allocation3 + $0x1d8] sm:$0xff] }
 0x184   :  { %v581_v26 = vld [vmem:[#allocation3 + $0x1f8] sm:$0xff] }
 0x185   :  { %1117 = vmatpush1.bf16.msra.mxu0 %v3397_v31  ;;  %v528_v31 = vld [vmem:[#allocation3 + $0x50] sm:$0xff] }
 0x186   :  { %1118 = vmatprep.subr.bf16.mxu0 %v3406_v37  ;;  %v3362_v34 = vcombine.high %v528_v31, %v532_v32  ;;  %v3363_v37 = vcombine.low %v529_v33, %v533_v35 }
 0x189   :  { %1119 = vmatpush1.bf16.msra.mxu0 %v3405_v40  ;;  %v536_v40 = vld [vmem:[#allocation3 + $0x90] sm:$0xff] }
 0x1ed   :  { %v287_v41 = vpop.xlane.xlu0 %286 }
 0x1ee   :  { %v309_v43 = vsub.f32 %v4400_v38, %v287_v41  ;;  %v3408_v41 = vcombine.high %v575_v36, %v579_v39 }
 0x1f0   :  { %v317_v45 = vmul.f32 1.442695, %v309_v43  ;;  %v3407_v43 = vcombine.low %v575_v36, %v579_v39  ;;  %1159 = vmatprep.subr.bf16.mxu1 %v3408_v41  ;;  %v3361_v36 = vcombine.low %v528_v31, %v532_v32  ;;  %v3364_v39 = vcombine.high %v529_v33, %v533_v35  ;;  %v540_v41 = vld [vmem:[#allocation3 + $0xb0] sm:$0xff]  ;;  %v589_v35 = vld [vmem:[#allocation3 + $0x238] sm:$0xff] }
 0x1f1   :  { %v290_v46 = vpop.xlane.xlu0 %289  ;;  %v293_v47 = vpop.xlane.xlu1 %292  ;;  %v3412_v31 = vcombine.high %v577_v25, %v581_v26  ;;  %v584_v32 = vld [vmem:[#allocation3 + $0x210] sm:$0xff] }
 0x1f2   :  { %4158 = vpow2.f32 %v317_v45  ;;  %v310_v50 = vsub.f32 %v4405_v42, %v290_v46  ;;  %v311_v49 = vsub.f32 %v4408_v44, %v293_v47  ;;  %v582_v45 = vld [vmem:[#allocation3 + $0x200] sm:$0xff]  ;;  %v583_v47 = vld [vmem:[#allocation3 + $0x208] sm:$0xff]  ;;  %1160 = vmatpush1.bf16.msra.mxu1 %v3407_v43  ;;  %v537_v43 = vld [vmem:[#allocation3 + $0x98] sm:$0xff] }
 0x1f3   :  { %v586_v46 = vld [vmem:[#allocation3 + $0x220] sm:$0xff]  ;;  %v588_v33 = vld [vmem:[#allocation3 + $0x230] sm:$0xff] }
 0x1f4   :  { %v319_v52 = vmul.f32 1.442695, %v310_v50  ;;  %v321_v53 = vmul.f32 1.442695, %v311_v49  ;;  %v3414_v50 = vcombine.high %v582_v45, %v586_v46  ;;  %v587_v49 = vld [vmem:[#allocation3 + $0x228] sm:$0xff] }
 0x1f5   :  { %v299_v54 = vpop.xlane.xlu0 %298  ;;  %v296_v55 = vpop.xlane.xlu1 %295 }
 0x1f6   :  { %4160 = vpow2.f32 %v319_v52  ;;  %v313_v58 = vsub.f32 %v4418_v48, %v299_v54  ;;  %v312_v59 = vsub.f32 %v4415_v51, %v296_v55  ;;  %v3413_v52 = vcombine.low %v582_v45, %v586_v46  ;;  %1120 = vmatprep.subr.bf16.mxu0 %v3414_v50  ;;  %v590_v55 = vld [vmem:[#allocation3 + $0x240] sm:$0xff]  ;;  %v541_v46 = vld [vmem:[#allocation3 + $0xb8] sm:$0xff] }
 0x1f7   :  { %4162 = vpow2.f32 %v321_v53  ;;  %v3416_v53 = vcombine.high %v583_v47, %v587_v49  ;;  %v3415_v54 = vcombine.low %v583_v47, %v587_v49  ;;  %v3370_v45 = vcombine.high %v536_v40, %v540_v41 }
 0x1f8   :  { %v325_v61 = vmul.f32 1.442695, %v313_v58  ;;  %v323_v38 = vmul.f32 1.442695, %v312_v59  ;;  %1121 = vmatpush1.bf16.msra.mxu0 %v3413_v52  ;;  %v594_v58 = vld [vmem:[#allocation3 + $0x260] sm:$0xff]  ;;  %v591_v59 = vld [vmem:[#allocation3 + $0x248] sm:$0xff]  ;;  %v3369_v47 = vcombine.low %v536_v40, %v540_v41  ;;  %v3371_v50 = vcombine.low %v537_v43, %v541_v46 }
 0x1f9   :  { %v305_v62 = vpop.xlane.xlu0 %304  ;;  %v302_v63 = vpop.xlane.xlu1 %301  ;;  %1161 = vmatprep.subr.bf16.mxu1 %v3416_v53  ;;  %v3372_v49 = vcombine.high %v537_v43, %v541_v46  ;;  %v544_v52 = vld [vmem:[#allocation3 + $0xd0] sm:$0xff]  ;;  %v597_v46 = vld [vmem:[#allocation3 + $0x278] sm:$0xff] }
 0x1fa   :  { %4164 = vpow2.f32 %v325_v61  ;;  %v315_v0 = vsub.f32 %v4428_v57, %v305_v62  ;;  %v314_v42 = vsub.f32 %v4425_v56, %v302_v63  ;;  %1162 = vmatpush1.bf16.msra.mxu1 %v3415_v54  ;;  %v3422_v61 = vcombine.high %v590_v55, %v594_v58  ;;  %v598_v63 = vld [vmem:[#allocation3 + $0x280] sm:$0xff]  ;;  %v548_v53 = vld [vmem:[#allocation3 + $0xf0] sm:$0xff]  ;;  %v545_v54 = vld [vmem:[#allocation3 + $0xd8] sm:$0xff] }
 0x1fb   :  { %4166 = vpow2.f32 %v323_v38  ;;  %v595_v38 = vld [vmem:[#allocation3 + $0x268] sm:$0xff]  ;;  %v3421_v62 = vcombine.low %v590_v55, %v594_v58  ;;  %v3378_v55 = vcombine.high %v544_v52, %v548_v53  ;;  %v549_v58 = vld [vmem:[#allocation3 + $0xf8] sm:$0xff]  ;;  %v592_v41 = vld [vmem:[#allocation3 + $0x250] sm:$0xff] }
 0x1fc   :  { %v4445_v44 = vpop.eup %4158  ;;  %v329_v1 = vmul.f32 1.442695, %v315_v0  ;;  %v327_v2 = vmul.f32 1.442695, %v314_v42  ;;  %v602_v0 = vld [vmem:[#allocation3 + $0x2a0] sm:$0xff]  ;;  %v3424_v42 = vcombine.high %v591_v59, %v595_v38  ;;  %1122 = vmatprep.subr.bf16.mxu0 %v3422_v61  ;;  %v3379_v61 = vcombine.low %v545_v54, %v549_v58  ;;  %v596_v43 = vld [vmem:[#allocation3 + $0x270] sm:$0xff] }
 0x1fd   :  { %v308_v3 = vpop.xlane.xlu1 %307  ;;  %v333_v48 = vsel %vm236_vm0, %v4445_v44, 0.0  ;;  %1123 = vmatpush1.bf16.msra.mxu0 %v3421_v62  ;;  %v552_v62 = vld [vmem:[#allocation3 + $0x110] sm:$0xff] }
 0x1fe   :  { %4168 = vpow2.f32 %v329_v1  ;;  %v316_v51 = vsub.f32 %v4434_v60, %v308_v3  ;;  %334 = vadd.xlane.f32.xlu0 %v333_v48  ;;  %v3423_v1 = vcombine.low %v591_v59, %v595_v38  ;;  %v599_v3 = vld [vmem:[#allocation3 + $0x288] sm:$0xff]  ;;  %1163 = vmatprep.subr.bf16.mxu1 %v3424_v42  ;;  %v3377_v59 = vcombine.low %v544_v52, %v548_v53  ;;  %v600_v53 = vld [vmem:[#allocation3 + $0x290] sm:$0xff] }
 0x1ff   :  { %4170 = vpow2.f32 %v327_v2  ;;  %v3430_v2 = vcombine.high %v598_v63, %v602_v0  ;;  %v603_v48 = vld [vmem:[#allocation3 + $0x2a8] sm:$0xff]  ;;  %v3380_v38 = vcombine.high %v545_v54, %v549_v58  ;;  %v604_v54 = vld [vmem:[#allocation3 + $0x2b0] sm:$0xff]  ;;  %v605_v58 = vld [vmem:[#allocation3 + $0x2b8] sm:$0xff] }
 0x200   :  { %v4450_v4 = vpop.eup %4160  ;;  %v331_v5 = vmul.f32 1.442695, %v316_v51  ;;  %v606_v51 = vld [vmem:[#allocation3 + $0x2c0] sm:$0xff]  ;;  %1164 = vmatpush1.bf16.msra.mxu1 %v3423_v1  ;;  %v557_v1 = vld [vmem:[#allocation3 + $0x138] sm:$0xff] }
 0x201   :  { %v4452_v57 = vpop.eup %4162  ;;  %v336_v56 = vsel %vm236_vm0, %v4450_v4, 0.0  ;;  %1124 = vmatprep.subr.bf16.mxu0 %v3430_v2 }
 0x202   :  { %4172 = vpow2.f32 %v331_v5  ;;  %337 = vadd.xlane.f32.xlu0 %v336_v56  ;;  %v339_v7 = vsel %vm236_vm0, %v4452_v57, 0.0  ;;  %v3432_v5 = vcombine.high %v599_v3, %v603_v48  ;;  %v610_v56 = vld [vmem:[#allocation3 + $0x2e0] sm:$0xff] }
 0x203   :  { %340 = vadd.xlane.f32.xlu1 %v339_v7  ;;  %v607_v7 = vld [vmem:[#allocation3 + $0x2c8] sm:$0xff]  ;;  %v3437_v18 = vcombine.low %v606_v51, %v610_v56 }
 0x204   :  { %v4458_v8 = vpop.eup %4164  ;;  %1165 = vmatprep.subr.bf16.mxu1 %v3432_v5  ;;  %v564_v5 = vld [vmem:[#allocation3 + $0x170] sm:$0xff] }
 0x205   :  { %v4460_v9 = vpop.eup %4166  ;;  %v345_v60 = vsel %vm236_vm0, %v4458_v8, 0.0 }
 0x206   :  { %346 = vadd.xlane.f32.xlu0 %v345_v60  ;;  %v342_v10 = vsel %vm236_vm0, %v4460_v9, 0.0  ;;  %v611_v60 = vld [vmem:[#allocation3 + $0x2e8] sm:$0xff] }
 0x207   :  { %343 = vadd.xlane.f32.xlu1 %v342_v10  ;;  %v3429_v10 = vcombine.low %v598_v63, %v602_v0  ;;  %v3440_v17 = vcombine.high %v607_v7, %v611_v60  ;;  %v3439_v19 = vcombine.low %v607_v7, %v611_v60  ;;  %v556_v63 = vld [vmem:[#allocation3 + $0x130] sm:$0xff]  ;;  %v553_v0 = vld [vmem:[#allocation3 + $0x118] sm:$0xff] }
 0x208   :  { %v4466_v11 = vpop.eup %4168  ;;  %v3386_v42 = vcombine.high %v552_v62, %v556_v63  ;;  %v3385_v2 = vcombine.low %v552_v62, %v556_v63  ;;  %v565_v60 = vld [vmem:[#allocation3 + $0x178] sm:$0xff]  ;;  %v608_v63 = vld [vmem:[#allocation3 + $0x2d0] sm:$0xff] }
 0x209   :  { %v4468_v13 = vpop.eup %4170  ;;  %v351_v14 = vsel %vm236_vm0, %v4466_v11, 0.0  ;;  %1125 = vmatpush1.bf16.msra.mxu0 %v3429_v10  ;;  %v568_v10 = vld [vmem:[#allocation3 + $0x190] sm:$0xff] }
 0x20a   :  { %352 = vadd.xlane.f32.xlu0 %v351_v14  ;;  %v348_v15 = vsel %vm236_vm0, %v4468_v13, 0.0  ;;  %v3431_v14 = vcombine.low %v599_v3, %v603_v48  ;;  %v3387_v3 = vcombine.low %v553_v0, %v557_v1  ;;  %v3388_v48 = vcombine.high %v553_v0, %v557_v1  ;;  %v612_v0 = vld [vmem:[#allocation3 + $0x2f0] sm:$0xff]  ;;  %v613_v1 = vld [vmem:[#allocation3 + $0x2f8] sm:$0xff] }
 0x20b   :  { %349 = vadd.xlane.f32.xlu1 %v348_v15  ;;  %v3438_v15 = vcombine.high %v606_v51, %v610_v56  ;;  %v560_v51 = vld [vmem:[#allocation3 + $0x150] sm:$0xff]  ;;  %v561_v56 = vld [vmem:[#allocation3 + $0x158] sm:$0xff] }
 0x20c   :  { %v4474_v16 = vpop.eup %4172  ;;  %1166 = vmatpush1.bf16.msra.mxu1 %v3431_v14  ;;  %v3394_v7 = vcombine.high %v560_v51, %v564_v5  ;;  %v572_v14 = vld [vmem:[#allocation3 + $0x1b0] sm:$0xff] }
 0x20d   :  { %v354_v20 = vsel %vm236_vm0, %v4474_v16, 0.0  ;;  %1126 = vmatprep.subr.bf16.mxu0 %v3438_v15  ;;  %1167 = vmatprep.subr.bf16.mxu1 %v3440_v17  ;;  %v3393_v15 = vcombine.low %v560_v51, %v564_v5  ;;  %v3395_v17 = vcombine.low %v561_v56, %v565_v60  ;;  %v3402_v21 = vcombine.high %v568_v10, %v572_v14 }
 0x20e   :  { %1127 = vmatpush1.bf16.msra.mxu0 %v3437_v18  ;;  %v3396_v18 = vcombine.high %v561_v56, %v565_v60  ;;  %v3441_v5 = vcombine.low %v608_v63, %v612_v0 }
 0x20f   :  { %355 = vadd.xlane.f32.xlu1 %v354_v20  ;;  %v517_v20 = vld [vmem:[%s4626_s1] sm:$0xff]  ;;  %1186 = vmatprep.subr.bf16.mxu0 %v3354_v24  ;;  %v580_v24 = vld [vmem:[#allocation3 + $0x1f0] sm:$0xff]  ;;  %s4248_s1 = smov 127  }
 0x210   :  { %v3348_v23 = vcombine.high %v517_v20, %v517_v20  ;;  %1168 = vmatpush1.bf16.msra.mxu1 %v3439_v19  ;;  %v4483_v30 = vcombine.low %v517_v20, %v517_v20  ;;  %v569_v19 = vld [vmem:[#allocation3 + $0x198] sm:$0xff] }
 0x211   :  { %1227 = vmatprep.subr.bf16.mxu1 %v3356_v27  ;;  %v573_v20 = vld [vmem:[#allocation3 + $0x1b8] sm:$0xff]  ;;  %v3401_v27 = vcombine.low %v568_v10, %v572_v14 }
 0x212   :  { %3445 = vmatprep.mubr.msk.bf16.mxu0 %vm1100_vm1, %v3348_v23  ;;  %3446 = vmatprep.mubr.msk.bf16.mxu1 %vm1100_vm1, %v3348_v23  ;;  %v3404_v22 = vcombine.high %v569_v19, %v573_v20 }
 0x213   :  { %1137 = vmatmul.mubr.bf16.vlgmr.msra.gmra.mrb[0].mxu0 %v4483_v30  ;;  %1178 = vmatmul.mubr.bf16.vlgmr.msra.gmra.mrb[0].mxu1 %v4483_v30 }
 0x214   :  { %1187 = vmatpush1.bf16.msra.mxu0 %v3353_v28  ;;  %1228 = vmatpush1.bf16.msra.mxu1 %v3355_v29  ;;  %v3403_v28 = vcombine.low %v569_v19, %v573_v20 }
 0x215   :  { %1188 = vmatprep.subr.bf16.mxu0 %v3362_v34  ;;  %3447 = vmatprep.mubr.msk.bf16.mxu0 %vm1100_vm1, %v3348_v23  ;;  %v585_v34 = vld [vmem:[#allocation3 + $0x218] sm:$0xff] }
 0x216   :  { %1229 = vmatprep.subr.bf16.mxu1 %v3364_v39  ;;  %3448 = vmatprep.mubr.msk.bf16.mxu1 %vm1100_vm1, %v3348_v23  ;;  %v576_v23 = vld [vmem:[#allocation3 + $0x1d0] sm:$0xff]  ;;  %v3418_v39 = vcombine.high %v584_v32, %v588_v33  ;;  %v3420_v40 = vcombine.high %v585_v34, %v589_v35 }
 0x217   :  { %v3410_v29 = vcombine.high %v576_v23, %v580_v24 }
 0x218   :  { %1189 = vmatpush1.bf16.msra.mxu0 %v3361_v36  ;;  %1230 = vmatpush1.bf16.msra.mxu1 %v3363_v37  ;;  %v3409_v36 = vcombine.low %v576_v23, %v580_v24  ;;  %v3411_v37 = vcombine.low %v577_v25, %v581_v26 }
 0x219   :  { %1190 = vmatprep.subr.bf16.mxu0 %v3370_v45  ;;  %1231 = vmatprep.subr.bf16.mxu1 %v3372_v49  ;;  %v593_v45 = vld [vmem:[#allocation3 + $0x258] sm:$0xff]  ;;  %v3426_v49 = vcombine.high %v592_v41, %v596_v43 }
 0x21a   :  { %v3428_v52 = vcombine.high %v593_v45, %v597_v46 }
 0x21c   :  { %1191 = vmatpush1.bf16.msra.mxu0 %v3369_v47  ;;  %1232 = vmatpush1.bf16.msra.mxu1 %v3371_v50  ;;  %v3417_v47 = vcombine.low %v584_v32, %v588_v33  ;;  %v3419_v50 = vcombine.low %v585_v34, %v589_v35 }
 0x21d   :  { %1192 = vmatprep.subr.bf16.mxu0 %v3378_v55  ;;  %1233 = vmatprep.subr.bf16.mxu1 %v3380_v38  ;;  %v601_v55 = vld [vmem:[#allocation3 + $0x298] sm:$0xff]  ;;  %v3434_v38 = vcombine.high %v600_v53, %v604_v54 }
 0x21e   :  { %v3436_v62 = vcombine.high %v601_v55, %v605_v58 }
 0x220   :  { %1193 = vmatpush1.bf16.msra.mxu0 %v3377_v59  ;;  %1234 = vmatpush1.bf16.msra.mxu1 %v3379_v61  ;;  %v3425_v59 = vcombine.low %v592_v41, %v596_v43  ;;  %v3427_v61 = vcombine.low %v593_v45, %v597_v46 }
 0x221   :  { %1194 = vmatprep.subr.bf16.mxu0 %v3386_v42  ;;  %1235 = vmatprep.subr.bf16.mxu1 %v3388_v48  ;;  %v609_v42 = vld [vmem:[#allocation3 + $0x2d8] sm:$0xff]  ;;  %v3442_v48 = vcombine.high %v608_v63, %v612_v0 }
 0x222   :  { %v3444_v51 = vcombine.high %v609_v42, %v613_v1  ;;  %v3443_v56 = vcombine.low %v609_v42, %v613_v1 }
 0x224   :  { %1195 = vmatpush1.bf16.msra.mxu0 %v3385_v2  ;;  %1236 = vmatpush1.bf16.msra.mxu1 %v3387_v3  ;;  %v3433_v2 = vcombine.low %v600_v53, %v604_v54  ;;  %v3435_v3 = vcombine.low %v601_v55, %v605_v58 }
 0x225   :  { %1196 = vmatprep.subr.bf16.mxu0 %v3394_v7  ;;  %1237 = vmatprep.subr.bf16.mxu1 %v3396_v18 }
 0x228   :  { %1197 = vmatpush1.bf16.msra.mxu0 %v3393_v15  ;;  %1238 = vmatpush1.bf16.msra.mxu1 %v3395_v17 }
 0x229   :  { %1198 = vmatprep.subr.bf16.mxu0 %v3402_v21  ;;  %1239 = vmatprep.subr.bf16.mxu1 %v3404_v22 }
 0x22c   :  { %1199 = vmatpush1.bf16.msra.mxu0 %v3401_v27  ;;  %1240 = vmatpush1.bf16.msra.mxu1 %v3403_v28 }
 0x22d   :  { %1200 = vmatprep.subr.bf16.mxu0 %v3410_v29  ;;  %1241 = vmatprep.subr.bf16.mxu1 %v3412_v31 }
 0x230   :  { %1201 = vmatpush1.bf16.msra.mxu0 %v3409_v36  ;;  %1242 = vmatpush1.bf16.msra.mxu1 %v3411_v37 }
 0x231   :  { %1202 = vmatprep.subr.bf16.mxu0 %v3418_v39  ;;  %1243 = vmatprep.subr.bf16.mxu1 %v3420_v40 }
 0x234   :  { %1203 = vmatpush1.bf16.msra.mxu0 %v3417_v47  ;;  %1244 = vmatpush1.bf16.msra.mxu1 %v3419_v50 }
 0x235   :  { %1204 = vmatprep.subr.bf16.mxu0 %v3426_v49  ;;  %1245 = vmatprep.subr.bf16.mxu1 %v3428_v52 }
 0x238   :  { %1205 = vmatpush1.bf16.msra.mxu0 %v3425_v59  ;;  %1246 = vmatpush1.bf16.msra.mxu1 %v3427_v61 }
 0x239   :  { %1206 = vmatprep.subr.bf16.mxu0 %v3434_v38  ;;  %1247 = vmatprep.subr.bf16.mxu1 %v3436_v62 }
 0x23c   :  { %1207 = vmatpush1.bf16.msra.mxu0 %v3433_v2  ;;  %1248 = vmatpush1.bf16.msra.mxu1 %v3435_v3 }
 0x23d   :  { %1208 = vmatprep.subr.bf16.mxu0 %v3442_v48  ;;  %1249 = vmatprep.subr.bf16.mxu1 %v3444_v51 }
 0x240   :  { %1209 = vmatpush1.bf16.msra.mxu0 %v3441_v5  ;;  %1250 = vmatpush1.bf16.msra.mxu1 %v3443_v56 }
 0x243   :  { %1219 = vmatmul.mubr.bf16.vlgmr.msra.gmra.mrb[4].mxu0 %v4483_v30  ;;  %1260 = vmatmul.mubr.bf16.vlgmr.msra.gmra.mrb[4].mxu1 %v4483_v30 }
 0x28b   :  { %v335_v7 = vpop.xlane.xlu0 %334 }
 0x28c   :  { %4174 = vrcp.f32 %v335_v7 }
 0x28f   :  { %v338_v60 = vpop.xlane.xlu0 %337 }
 0x290   :  { %4176 = vrcp.f32 %v338_v60  ;;  %v341_v10 = vpop.xlane.xlu1 %340 }
 0x291   :  { %4178 = vrcp.f32 %v341_v10 }
 0x293   :  { %v347_v14 = vpop.xlane.xlu0 %346 }
 0x294   :  { %4180 = vrcp.f32 %v347_v14  ;;  %v344_v15 = vpop.xlane.xlu1 %343 }
 0x295   :  { %4182 = vrcp.f32 %v344_v15 }
 0x296   :  { %v4175_v17 = vpop.eup %4174 }
 0x297   :  { %v353_v18 = vpop.xlane.xlu0 %352  ;;  %v365_v19 = vmul.f32 %v4175_v17, %v4445_v44 }
 0x298   :  { %4184 = vrcp.f32 %v353_v18  ;;  %v350_v20 = vpop.xlane.xlu1 %349 }
 0x299   :  { %4186 = vrcp.f32 %v350_v20  ;;  %v373_v21 = vsel %vm236_vm0, %v365_v19, 0.0 }
 0x29a   :  { %v4177_v30 = vpop.eup %4176  ;;  %v374_v22 = vrot.slane %v373_v21, 4 }
 0x29b   :  { %v4179_v23 = vpop.eup %4178  ;;  %v366_v24 = vmul.f32 %v4177_v30, %v4450_v4 }
 0x29c   :  { %v356_v25 = vpop.xlane.xlu1 %355  ;;  %v375_v26 = vadd.f32 %v374_v22, %v373_v21  ;;  %v367_v27 = vmul.f32 %v4179_v23, %v4452_v57 }
 0x29d   :  { %4188 = vrcp.f32 %v356_v25  ;;  %v380_v28 = vsel %vm236_vm0, %v366_v24, 0.0 }
 0x29e   :  { %v4181_v29 = vpop.eup %4180  ;;  %v376_v31 = vrot.slane %v375_v26, 2  ;;  %v381_v44 = vrot.slane %v380_v28, 4  ;;  %v387_v32 = vsel %vm236_vm0, %v367_v27, 0.0 }
 0x29f   :  { %v4183_v33 = vpop.eup %4182  ;;  %v388_v34 = vrot.slane %v387_v32, 4  ;;  %v369_v35 = vmul.f32 %v4181_v29, %v4458_v8 }
 0x2a0   :  { %v377_v36 = vadd.f32 %v376_v31, %v375_v26  ;;  %v382_v37 = vadd.f32 %v381_v44, %v380_v28  ;;  %v368_v4 = vmul.f32 %v4183_v33, %v4460_v9  ;;  %v4249_v26 = vmov 97  }
 0x2a1   :  { %v389_v39 = vadd.f32 %v388_v34, %v387_v32  ;;  %v401_v40 = vsel %vm236_vm0, %v369_v35, 0.0  ;;  %3753 = vset.pattern.permute.xlu0 %v4249_v26  ;;  %3754 = vset.pattern.permute.xlu1 %v4249_v26  ;;  %v4527_v35 = vld [vmem:[%s4625_s0] sm:$0xff]  ;;  %s4252_s0 = smov 96  }
 0x2a2   :  { %v4185_v57 = vpop.eup %4184  ;;  %v378_v41 = vrot.slane %v377_v36, 1  ;;  %v383_v43 = vrot.slane %v382_v37, 2  ;;  %v402_v45 = vrot.slane %v401_v40, 4  ;;  %v394_v46 = vsel %vm236_vm0, %v368_v4, 0.0  ;;  %v3769_v26 = vld [vmem:[#allocation5 + $0x2c] ss:$16 sps:$4 sm:$0xff]  }
 0x2a3   :  { %v4187_v47 = vpop.eup %4186  ;;  %v390_v50 = vrot.slane %v389_v39, 2  ;;  %v395_v49 = vrot.slane %v394_v46, 4  ;;  %v371_v52 = vmul.f32 %v4185_v57, %v4466_v11 }
 0x2a4   :  { %v4502_v53 = vadd.f32 %v378_v41, %v377_v36  ;;  %v384_v8 = vadd.f32 %v383_v43, %v382_v37  ;;  %v403_v54 = vadd.f32 %v402_v45, %v401_v40  ;;  %v370_v9 = vmul.f32 %v4187_v47, %v4468_v13 }
 0x2a5   :  { %v391_v55 = vadd.f32 %v390_v50, %v389_v39  ;;  %v396_v58 = vadd.f32 %v395_v49, %v394_v46  ;;  %v415_v59 = vsel %vm236_vm0, %v371_v52, 0.0 }
 0x2a6   :  { %459 = vrot.lane.b32.xlu1 %v4502_v53, %s4248_s1  ;;  %v385_v61 = vrot.slane %v384_v8, 1  ;;  %v404_v38 = vrot.slane %v403_v54, 2  ;;  %v416_v62 = vrot.slane %v415_v59, 4  ;;  %v408_v63 = vsel %vm236_vm0, %v370_v9, 0.0 }
 0x2a7   :  { %v4189_v11 = vpop.eup %4188  ;;  %v392_v0 = vrot.slane %v391_v55, 1  ;;  %v397_v42 = vrot.slane %v396_v58, 2  ;;  %v409_v1 = vrot.slane %v408_v63, 4 }
 0x2a8   :  { %v386_v2 = vadd.f32 %v385_v61, %v384_v8  ;;  %v405_v3 = vadd.f32 %v404_v38, %v403_v54  ;;  %v417_v13 = vadd.f32 %v416_v62, %v415_v59  ;;  %v372_v48 = vmul.f32 %v4189_v11, %v4474_v16 }
 0x2a9   :  { %v393_v51 = vadd.f32 %v392_v0, %v391_v55  ;;  %v398_v5 = vadd.f32 %v397_v42, %v396_v58  ;;  %v410_v56 = vadd.f32 %v409_v1, %v408_v63 }
 0x2aa   :  { %461 = vrot.lane.b32.xlu0 %v386_v2, %s4248_s1  ;;  %v406_v7 = vrot.slane %v405_v3, 1  ;;  %v418_v60 = vrot.slane %v417_v13, 2  ;;  %v422_v10 = vsel %vm236_vm0, %v372_v48, 0.0  ;;  %v438_v30 = vsel %vm437_vm2, %v386_v2, %v4502_v53 }
 0x2ab   :  { %463 = vrot.lane.b32.xlu1 %v393_v51, %s4248_s1  ;;  %v399_v14 = vrot.slane %v398_v5, 1  ;;  %v411_v15 = vrot.slane %v410_v56, 2  ;;  %v423_v17 = vrot.slane %v422_v10, 4  ;;  %v440_v27 = vsel %vm439_vm3, %v393_v51, %v438_v30 }
 0x2ac   :  { %v407_v18 = vadd.f32 %v406_v7, %v405_v3  ;;  %v419_v19 = vadd.f32 %v418_v60, %v417_v13 }
 0x2ad   :  { %v400_v20 = vadd.f32 %v399_v14, %v398_v5  ;;  %v412_v21 = vadd.f32 %v411_v15, %v410_v56  ;;  %v424_v16 = vadd.f32 %v423_v17, %v422_v10 }
 0x2ae   :  { %v420_v22 = vrot.slane %v419_v19, 1 }
 0x2af   :  { %467 = vrot.lane.b32.xlu1 %v407_v18, %s4248_s1  ;;  %465 = vrot.lane.b32.xlu0 %v400_v20, %s4248_s1  ;;  %v413_v23 = vrot.slane %v412_v21, 1  ;;  %v425_v24 = vrot.slane %v424_v16, 2  ;;  %v442_v31 = vsel %vm441_vm4, %v400_v20, %v440_v27  ;;  %v3767_v27 = vld [vmem:[#allocation5 + $0x28] ss:$16 sps:$4 sm:$0xff]  }
 0x2b0   :  { %v421_v25 = vadd.f32 %v420_v22, %v419_v19  ;;  %v444_v33 = vsel %vm443_vm5, %v407_v18, %v442_v31  ;;  %v3761_v22 = vld [vmem:[#allocation5 + $0x8] ss:$16 sps:$4 sm:$0xff]   ;;  %v3770_v31 = vld [vmem:[#allocation5 + $0x40] ss:$16 sps:$4 sm:$0xff]  }
 0x2b1   :  { %v414_v28 = vadd.f32 %v413_v23, %v412_v21  ;;  %v426_v29 = vadd.f32 %v425_v24, %v424_v16  ;;  %v3760_v21 = vld [vmem:[#allocation5 + $0x4] ss:$16 sps:$4 sm:$0xff]   ;;  %v3763_v23 = vld [vmem:[#allocation5 + $0xc] ss:$16 sps:$4 sm:$0xff]  }
 0x2b2   :  { %2968 = vmatprep.subr.bf16.mxu0 %v3760_v21  ;;  %v3766_v24 = vld [vmem:[#allocation5 + $0x24] ss:$16 sps:$4 sm:$0xff]   ;;  %3132 = vmatprep.subr.bf16.mxu1 %v3763_v23  ;;  %v3830_v21 = vld [vmem:[#allocation5 + $0x180] ss:$16 sps:$4 sm:$0xff]  }
 0x2b3   :  { %471 = vrot.lane.b32.xlu1 %v421_v25, %s4248_s1  ;;  %469 = vrot.lane.b32.xlu0 %v414_v28, %s4248_s1  ;;  %v427_v44 = vrot.slane %v426_v29, 1  ;;  %v446_v34 = vsel %vm445_vm6, %v414_v28, %v444_v33  ;;  %v3781_v33 = vld [vmem:[#allocation5 + $0x6c] ss:$16 sps:$4 sm:$0xff]   ;;  %v3838_v23 = vld [vmem:[#allocation5 + $0x1a4] ss:$16 sps:$4 sm:$0xff]  }
 0x2b4   :  { %v448_v36 = vsel %vm447_vm7, %v421_v25, %v446_v34  ;;  %3133 = vmatpush1.bf16.msra.mxu1 %v3761_v22  ;;  %v3776_v34 = vld [vmem:[#allocation5 + $0x60] ss:$16 sps:$4 sm:$0xff]   ;;  %v3833_v22 = vld [vmem:[#allocation5 + $0x188] ss:$16 sps:$4 sm:$0xff]  }
 0x2b5   :  { %v428_v32 = vadd.f32 %v427_v44, %v426_v29  ;;  %3134 = vmatprep.subr.bf16.mxu1 %v3769_v26  ;;  %v3775_v29 = vld [vmem:[#allocation5 + $0x4c] ss:$16 sps:$4 sm:$0xff]   ;;  %v3773_v44 = vld [vmem:[#allocation5 + $0x48] ss:$16 sps:$4 sm:$0xff]  }
 0x2b6   :  { %v3839_v26 = vld [vmem:[#allocation5 + $0x1a8] ss:$16 sps:$4 sm:$0xff]  }
 0x2b7   :  { %473 = vrot.lane.b32.xlu0 %v428_v32, %s4248_s1  ;;  %455 = vrot.lane.b32.xlu1 %v4527_v35, %s4250_s13  ;;  %v450_v37 = vsel %vm449_vm8, %v428_v32, %v448_v36  ;;  %v3779_v36 = vld [vmem:[#allocation5 + $0x68] ss:$16 sps:$4 sm:$0xff]  }
 0x2b8   :  { %3135 = vmatpush1.bf16.msra.mxu1 %v3767_v27 }
 0x2b9   :  { %3136 = vmatprep.subr.bf16.mxu1 %v3775_v29 }
 0x2bb   :  { %451 = vrot.lane.b32.xlu0 %v450_v37, %s4251_s14  ;;  %v3784_v37 = vld [vmem:[#allocation5 + $0x84] ss:$16 sps:$4 sm:$0xff]  }
 0x2bc   :  { %3137 = vmatpush1.bf16.msra.mxu1 %v3773_v44  ;;  %v3842_v44 = vld [vmem:[#allocation5 + $0x1c0] ss:$16 sps:$4 sm:$0xff]  }
 0x2bd   :  { %3138 = vmatprep.subr.bf16.mxu1 %v3781_v33  ;;  %v3845_v33 = vld [vmem:[#allocation5 + $0x1c8] ss:$16 sps:$4 sm:$0xff]  }
 0x2c0   :  { %3139 = vmatpush1.bf16.msra.mxu1 %v3779_v36  ;;  %v3850_v36 = vld [vmem:[#allocation5 + $0x1e4] ss:$16 sps:$4 sm:$0xff]  }
 0x2e6   :  { %v4534_v9 = vpop.f32.mrb[0].mxu0  ;;  %v4536_v55 = vpop.f32.mrb[0].mxu1 }
 0x2e7   :  { %v4540_v11 = vpop.f32.mrb[1].mxu0  ;;  %v4542_v0 = vpop.f32.mrb[1].mxu1 }
 0x2e8   :  { %v1142_v42 = vpop.f32.mrb[2].mxu0  ;;  %v1183_v1 = vpop.f32.mrb[2].mxu1 }
 0x2e9   :  { %v1143_v3 = vpop.f32.mrb[3].mxu0  ;;  %v1184_v13 = vpop.f32.mrb[3].mxu1  ;;  %v3806_v42 = vld [vmem:[#allocation5 + $0x100] ss:$16 sps:$4 sm:$0xff]   ;;  %v3809_v1 = vld [vmem:[#allocation5 + $0x108] ss:$16 sps:$4 sm:$0xff]  }
 0x2ea   :  { %v3817_v3 = vld [vmem:[#allocation5 + $0x12c] ss:$16 sps:$4 sm:$0xff]   ;;  %v3812_v13 = vld [vmem:[#allocation5 + $0x120] ss:$16 sps:$4 sm:$0xff]  }
 0x316   :  { %v4551_v19 = vpop.f32.mrb[4].mxu1 }
 0x317   :  { %v4555_v30 = vpop.f32.mrb[5].mxu1 }
 0x318   :  { %v460_v4 = vpop.permute.xlu1 %459 }
 0x319   :  { %v483_v45 = vadd.f32 %v460_v4, %v4502_v53  ;;  %v3787_v4 = vld [vmem:[#allocation5 + $0x8c] ss:$16 sps:$4 sm:$0xff]  }
 0x31a   :  { %3140 = vmatprep.subr.bf16.mxu1 %v3787_v4  ;;  %v3848_v4 = vld [vmem:[#allocation5 + $0x1e0] ss:$16 sps:$4 sm:$0xff]  }
 0x31c   :  { %v462_v39 = vpop.permute.xlu0 %461 }
 0x31d   :  { %v484_v40 = vadd.f32 %v462_v39, %v386_v2  ;;  %v464_v57 = vpop.permute.xlu1 %463  ;;  %v3782_v39 = vld [vmem:[#allocation5 + $0x80] ss:$16 sps:$4 sm:$0xff]  }
 0x31e   :  { %v485_v41 = vadd.f32 %v464_v57, %v393_v51  ;;  %v3790_v57 = vld [vmem:[#allocation5 + $0xa4] ss:$16 sps:$4 sm:$0xff]  }
 0x31f   :  { %v499_v43 = vrot.slane %v484_v40, 7  ;;  %v3785_v40 = vld [vmem:[#allocation5 + $0x88] ss:$16 sps:$4 sm:$0xff]  }
 0x320   :  { %v501_v46 = vrot.slane %v485_v41, 6  ;;  %v3793_v41 = vld [vmem:[#allocation5 + $0xac] ss:$16 sps:$4 sm:$0xff]   ;;  %3141 = vmatpush1.bf16.msra.mxu1 %v3785_v40 }
 0x321   :  { %v466_v47 = vpop.permute.xlu0 %465  ;;  %v468_v50 = vpop.permute.xlu1 %467  ;;  %v500_v49 = vsel %vm437_vm2, %v499_v43, %v483_v45  ;;  %v3788_v43 = vld [vmem:[#allocation5 + $0xa0] ss:$16 sps:$4 sm:$0xff]   ;;  %3142 = vmatprep.subr.bf16.mxu1 %v3793_v41  ;;  %v3859_v40 = vld [vmem:[#allocation5 + $0x20c] ss:$16 sps:$4 sm:$0xff]  }
 0x322   :  { %v486_v52 = vadd.f32 %v466_v47, %v400_v20  ;;  %v487_v8 = vadd.f32 %v468_v50, %v407_v18  ;;  %v502_v58 = vsel %vm439_vm3, %v501_v46, %v500_v49  ;;  %v4549_v18 = vpop.f32.mrb[4].mxu0  ;;  %v3758_v20 = vld [vmem:[#allocation5] ss:$16 sps:$4 sm:$0xff]   ;;  %v1265_v46 = vpop.f32.mrb[6].mxu1  ;;  %v3791_v47 = vld [vmem:[#allocation5 + $0xa8] ss:$16 sps:$4 sm:$0xff]  }
 0x323   :  { %v4553_v16 = vpop.f32.mrb[5].mxu0  ;;  %2969 = vmatpush1.bf16.msra.mxu0 %v3758_v20  ;;  %v3796_v50 = vld [vmem:[#allocation5 + $0xc4] ss:$16 sps:$4 sm:$0xff]   ;;  %v3835_v20 = vld [vmem:[#allocation5 + $0x18c] ss:$16 sps:$4 sm:$0xff]  }
 0x324   :  { %v503_v54 = vrot.slane %v486_v52, 5  ;;  %v505_v59 = vrot.slane %v487_v8, 4  ;;  %2970 = vmatprep.subr.bf16.mxu0 %v3766_v24  ;;  %v1224_v45 = vpop.f32.mrb[6].mxu0  ;;  %v1266_v52 = vpop.f32.mrb[7].mxu1  ;;  %v3799_v8 = vld [vmem:[#allocation5 + $0xcc] ss:$16 sps:$4 sm:$0xff]   ;;  %3143 = vmatpush1.bf16.msra.mxu1 %v3791_v47 }
 0x325   :  { %v470_v61 = vpop.permute.xlu0 %469  ;;  %v472_v38 = vpop.permute.xlu1 %471  ;;  %3144 = vmatprep.subr.bf16.mxu1 %v3799_v8  ;;  %v3841_v24 = vld [vmem:[#allocation5 + $0x1ac] ss:$16 sps:$4 sm:$0xff]   ;;  %v1314_v8 = vsub.s32 6, %v4340_v6 }
 0x326   :  { %v504_v62 = vsel %vm441_vm4, %v503_v54, %v502_v58  ;;  %v488_v53 = vadd.f32 %v470_v61, %v414_v28  ;;  %v489_v63 = vadd.f32 %v472_v38, %v421_v25  ;;  %v3764_v25 = vld [vmem:[#allocation5 + $0x20] ss:$16 sps:$4 sm:$0xff]   ;;  %v3772_v28 = vld [vmem:[#allocation5 + $0x44] ss:$16 sps:$4 sm:$0xff]   ;;  %v1225_v49 = vpop.f32.mrb[7].mxu0 }
 0x327   :  { %v506_v48 = vsel %vm443_vm5, %v505_v59, %v504_v62  ;;  %2971 = vmatpush1.bf16.msra.mxu0 %v3764_v25  ;;  %v3794_v54 = vld [vmem:[#allocation5 + $0xc0] ss:$16 sps:$4 sm:$0xff]   ;;  %v3797_v58 = vld [vmem:[#allocation5 + $0xc8] ss:$16 sps:$4 sm:$0xff]   ;;  %v3802_v59 = vld [vmem:[#allocation5 + $0xe4] ss:$16 sps:$4 sm:$0xff]  }
 0x328   :  { %v507_v2 = vrot.slane %v488_v53, 3  ;;  %v509_v51 = vrot.slane %v489_v63, 2  ;;  %2972 = vmatprep.subr.bf16.mxu0 %v3772_v28  ;;  %v3805_v61 = vld [vmem:[#allocation5 + $0xec] ss:$16 sps:$4 sm:$0xff]   ;;  %v3800_v38 = vld [vmem:[#allocation5 + $0xe0] ss:$16 sps:$4 sm:$0xff]   ;;  %3145 = vmatpush1.bf16.msra.mxu1 %v3797_v58 }
 0x329   :  { %v474_v5 = vpop.permute.xlu0 %473  ;;  %v3803_v62 = vld [vmem:[#allocation5 + $0xe8] ss:$16 sps:$4 sm:$0xff]   ;;  %v3808_v53 = vld [vmem:[#allocation5 + $0x104] ss:$16 sps:$4 sm:$0xff]   ;;  %3146 = vmatprep.subr.bf16.mxu1 %v3805_v61  ;;  %v3811_v63 = vld [vmem:[#allocation5 + $0x10c] ss:$16 sps:$4 sm:$0xff]   ;;  %v456_v27 = vpop.permute.xlu1 %455 }
 0x32a   :  { %v508_v56 = vsel %vm445_vm6, %v507_v2, %v506_v48  ;;  %v490_v7 = vadd.f32 %v474_v5, %v428_v32  ;;  %v3778_v32 = vld [vmem:[#allocation5 + $0x64] ss:$16 sps:$4 sm:$0xff]   ;;  %v3815_v48 = vld [vmem:[#allocation5 + $0x128] ss:$16 sps:$4 sm:$0xff]   ;;  %v3823_v5 = vld [vmem:[#allocation5 + $0x14c] ss:$16 sps:$4 sm:$0xff]   ;;  %v458_v28 = vmul.f32 %v4527_v35, %v456_v27 }
 0x32b   :  { %v510_v14 = vsel %vm447_vm7, %v509_v51, %v508_v56  ;;  %2973 = vmatpush1.bf16.msra.mxu0 %v3770_v31  ;;  %v3814_v2 = vld [vmem:[#allocation5 + $0x124] ss:$16 sps:$4 sm:$0xff]   ;;  %v3818_v56 = vld [vmem:[#allocation5 + $0x140] ss:$16 sps:$4 sm:$0xff]   ;;  %v4567_v49 = vsub.s32 3, %v4340_v6 }
 0x32c   :  { %v511_v60 = vrot.slane %v490_v7, 1  ;;  %2974 = vmatprep.subr.bf16.mxu0 %v3778_v32  ;;  %3147 = vmatpush1.bf16.msra.mxu1 %v3803_v62  ;;  %v3820_v51 = vld [vmem:[#allocation5 + $0x144] ss:$16 sps:$4 sm:$0xff]   ;;  %v3821_v7 = vld [vmem:[#allocation5 + $0x148] ss:$16 sps:$4 sm:$0xff]  }
 0x32d   :  { %v452_v10 = vpop.permute.xlu0 %451  ;;  %3148 = vmatprep.subr.bf16.mxu1 %v3811_v63  ;;  %v3836_v25 = vld [vmem:[#allocation5 + $0x1a0] ss:$16 sps:$4 sm:$0xff]   ;;  %v3844_v32 = vld [vmem:[#allocation5 + $0x1c4] ss:$16 sps:$4 sm:$0xff]  }
 0x32e   :  { %v454_v15 = vmul.f32 %v4527_v35, %v452_v10  ;;  %v512_v17 = vsel %vm449_vm8, %v511_v60, %v510_v14  ;;  %v3826_v60 = vld [vmem:[#allocation5 + $0x164] ss:$16 sps:$4 sm:$0xff]   ;;  %v3829_v10 = vld [vmem:[#allocation5 + $0x16c] ss:$16 sps:$4 sm:$0xff]   ;;  %v3824_v14 = vld [vmem:[#allocation5 + $0x160] ss:$16 sps:$4 sm:$0xff]  }
 0x32f   :  { %513 = vrot.lane.b32.xlu1 %v512_v17, %s4252_s0  ;;  %2975 = vmatpush1.bf16.msra.mxu0 %v3776_v34  ;;  %v3832_v17 = vld [vmem:[#allocation5 + $0x184] ss:$16 sps:$4 sm:$0xff]   ;;  %v3847_v34 = vld [vmem:[#allocation5 + $0x1cc] ss:$16 sps:$4 sm:$0xff]  }
 0x330   :  { %1270 = vperm.xlu0 %3753, %v454_v15   ;;  %2976 = vmatprep.subr.bf16.mxu0 %v3784_v37  ;;  %v3827_v15 = vld [vmem:[#allocation5 + $0x168] ss:$16 sps:$4 sm:$0xff]   ;;  %v3853_v37 = vld [vmem:[#allocation5 + $0x1ec] ss:$16 sps:$4 sm:$0xff]   ;;  %v3856_v35 = vld [vmem:[#allocation5 + $0x204] ss:$16 sps:$4 sm:$0xff]  }
 0x331   :  { %3149 = vmatpush1.bf16.msra.mxu1 %v3809_v1  ;;  %v1281_v52 = vld [vmem:[%s4630_s5] sm:$0xff] }
 0x332   :  { %3150 = vmatprep.subr.bf16.mxu1 %v3817_v3  ;;  %v1291_v58 = vrot.slane %v1281_v52, %v4350_v12 }
 0x333   :  { %2977 = vmatpush1.bf16.msra.mxu0 %v3782_v39  ;;  %v3851_v39 = vld [vmem:[#allocation5 + $0x1e8] ss:$16 sps:$4 sm:$0xff]  }
 0x334   :  { %2978 = vmatprep.subr.bf16.mxu0 %v3790_v57 }
 0x335   :  { %3151 = vmatpush1.bf16.msra.mxu1 %v3815_v48 }
 0x336   :  { %3152 = vmatprep.subr.bf16.mxu1 %v3823_v5 }
 0x337   :  { %2979 = vmatpush1.bf16.msra.mxu0 %v3788_v43 }
 0x338   :  { %2980 = vmatprep.subr.bf16.mxu0 %v3796_v50  ;;  %v4564_v50 = vsub.s32 1, %v4340_v6 }
 0x339   :  { %3153 = vmatpush1.bf16.msra.mxu1 %v3821_v7 }
 0x33a   :  { %3154 = vmatprep.subr.bf16.mxu1 %v3829_v10 }
 0x33b   :  { %2981 = vmatpush1.bf16.msra.mxu0 %v3794_v54  ;;  %v1295_v54 = vrot.slane %v1281_v52, %v4564_v50 }
 0x33c   :  { %2982 = vmatprep.subr.bf16.mxu0 %v3802_v59  ;;  %v1303_v59 = vrot.slane %v1281_v52, %v4567_v49 }
 0x33d   :  { %3155 = vmatpush1.bf16.msra.mxu1 %v3827_v15 }
 0x33e   :  { %3156 = vmatprep.subr.bf16.mxu1 %v3835_v20 }
 0x33f   :  { %2983 = vmatpush1.bf16.msra.mxu0 %v3800_v38 }
 0x340   :  { %2984 = vmatprep.subr.bf16.mxu0 %v3808_v53 }
 0x341   :  { %3157 = vmatpush1.bf16.msra.mxu1 %v3833_v22 }
 0x342   :  { %3158 = vmatprep.subr.bf16.mxu1 %v3841_v24 }
 0x343   :  { %2985 = vmatpush1.bf16.msra.mxu0 %v3806_v42 }
 0x344   :  { %2986 = vmatprep.subr.bf16.mxu0 %v3814_v2  ;;  %v1315_v2 = vrot.slane %v1281_v52, %v1314_v8 }
 0x345   :  { %3159 = vmatpush1.bf16.msra.mxu1 %v3839_v26 }
 0x346   :  { %3160 = vmatprep.subr.bf16.mxu1 %v3847_v34 }
 0x347   :  { %2987 = vmatpush1.bf16.msra.mxu0 %v3812_v13 }
 0x348   :  { %2988 = vmatprep.subr.bf16.mxu0 %v3820_v51 }
 0x349   :  { %3161 = vmatpush1.bf16.msra.mxu1 %v3845_v33 }
 0x34a   :  { %3162 = vmatprep.subr.bf16.mxu1 %v3853_v37 }
 0x34b   :  { %2989 = vmatpush1.bf16.msra.mxu0 %v3818_v56 }
 0x34c   :  { %2990 = vmatprep.subr.bf16.mxu0 %v3826_v60 }
 0x34d   :  { %3163 = vmatpush1.bf16.msra.mxu1 %v3851_v39 }
 0x34e   :  { %3173 = vmatprep.subr.bf16.mxu1 %v3859_v40 }
 0x34f   :  { %2991 = vmatpush1.bf16.msra.mxu0 %v3824_v14 }
 0x350   :  { %2992 = vmatprep.subr.bf16.mxu0 %v3832_v17 }
 0x353   :  { %2993 = vmatpush1.bf16.msra.mxu0 %v3830_v21 }
 0x354   :  { %2994 = vmatprep.subr.bf16.mxu0 %v3838_v23 }
 0x357   :  { %2995 = vmatpush1.bf16.msra.mxu0 %v3836_v25 }
 0x358   :  { %2996 = vmatprep.subr.bf16.mxu0 %v3844_v32 }
 0x35b   :  { %2997 = vmatpush1.bf16.msra.mxu0 %v3842_v44 }
 0x35c   :  { %2998 = vmatprep.subr.bf16.mxu0 %v3850_v36 }
 0x35f   :  { %2999 = vmatpush1.bf16.msra.mxu0 %v3848_v4 }
 0x360   :  { %3009 = vmatprep.subr.bf16.mxu0 %v3856_v35 }
 0x3a1   :  { %v514_v29 = vpop.permute.xlu1 %513 }
 0x3a2   :  { %v516_v31 = vmul.f32 %v514_v29, %v458_v28 }
 0x3a4   :  { %1284 = vperm.xlu1 %3754, %v516_v31  }
 0x3af   :  { %v1271_v57 = vpop.permute.xlu0 %1270 }
 0x3b0   :  { %v1275_v41 = vmul.f32 %v1271_v57, %v4536_v55  ;;  %v1278_v43 = vmul.f32 %v1271_v57, %v4553_v16  ;;  %v1277_v45 = vmul.f32 %v1271_v57, %v4549_v18  ;;  %v1280_v46 = vmul.f32 %v1271_v57, %v4555_v30 }
 0x3b1   :  { %v1279_v47 = vmul.f32 %v1271_v57, %v4551_v19  ;;  %v4573_v55 = vsub.s32 2, %v4340_v6  ;;  %v1310_v16 = vsub.s32 5, %v4340_v6  ;;  %v1306_v18 = vsub.s32 4, %v4340_v6  ;;  %v1344_v19 = vld [vmem:[%s4631_s6] sm:$0xff] }
 0x3b2   :  { %v1318_v30 = vsub.s32 7, %v4340_v6  ;;  %v1353_v61 = vrot.slane %v1344_v19, %v4564_v50  ;;  %v1349_v63 = vrot.slane %v1344_v19, %v4350_v12  ;;  %v1361_v42 = vrot.slane %v1344_v19, %v4567_v49 }
 0x3b3   :  { %v1299_v38 = vrot.slane %v1281_v52, %v4573_v55  ;;  %v1311_v62 = vrot.slane %v1281_v52, %v1310_v16  ;;  %v1307_v53 = vrot.slane %v1281_v52, %v1306_v18  ;;  %v1357_v6 = vrot.slane %v1344_v19, %v4573_v55 }
 0x3b4   :  { %v1319_v1 = vrot.slane %v1281_v52, %v1318_v30  ;;  %v1369_v3 = vrot.slane %v1344_v19, %v1310_v16  ;;  %v1365_v13 = vrot.slane %v1344_v19, %v1306_v18  ;;  %v1377_v48 = vrot.slane %v1344_v19, %v1318_v30  ;;  %v3860_v52 = vld [vmem:[#allocation5 + $0x220] ss:$16 sps:$4 sm:$0xff]   ;;  %v3863_v16 = vld [vmem:[#allocation5 + $0x228] ss:$16 sps:$4 sm:$0xff]   ;;  %v3868_v18 = vld [vmem:[#allocation5 + $0x244] ss:$16 sps:$4 sm:$0xff]  }
 0x3b5   :  { %v1274_v5 = vmul.f32 %v1271_v57, %v4540_v11  ;;  %v1273_v56 = vmul.f32 %v1271_v57, %v4534_v9  ;;  %v1276_v7 = vmul.f32 %v1271_v57, %v4542_v0  ;;  %v1373_v60 = vrot.slane %v1344_v19, %v1314_v8  ;;  %v3854_v57 = vld [vmem:[#allocation5 + $0x200] ss:$16 sps:$4 sm:$0xff]   ;;  %v3871_v19 = vld [vmem:[#allocation5 + $0x24c] ss:$16 sps:$4 sm:$0xff]   ;;  %v3869_v8 = vld [vmem:[#allocation5 + $0x248] ss:$16 sps:$4 sm:$0xff]  }
 0x3b6   :  { %v3866_v30 = vld [vmem:[#allocation5 + $0x240] ss:$16 sps:$4 sm:$0xff]  }
 0x423   :  { %v1285_v51 = vpop.permute.xlu1 %1284 }
 0x424   :  { %v1329_v10 = vmul.f32 %v1295_v54, %v1285_v51  ;;  %v1328_v14 = vmul.f32 %v1291_v58, %v1285_v51  ;;  %v1331_v15 = vmul.f32 %v1303_v59, %v1285_v51  ;;  %v1330_v17 = vmul.f32 %v1299_v38, %v1285_v51  ;;  %v3874_v54 = vld [vmem:[#allocation5 + $0x264] ss:$16 sps:$4 sm:$0xff]   ;;  %v3877_v58 = vld [vmem:[#allocation5 + $0x26c] ss:$16 sps:$4 sm:$0xff]   ;;  %v3872_v59 = vld [vmem:[#allocation5 + $0x260] ss:$16 sps:$4 sm:$0xff]  }
 0x425   :  { %v1333_v20 = vmul.f32 %v1311_v62, %v1285_v51  ;;  %v1332_v21 = vmul.f32 %v1307_v53, %v1285_v51  ;;  %v1335_v22 = vmul.f32 %v1319_v1, %v1285_v51  ;;  %v1334_v23 = vmul.f32 %v1315_v2, %v1285_v51  ;;  %v3880_v38 = vld [vmem:[#allocation5 + $0x284] ss:$16 sps:$4 sm:$0xff]   ;;  %v3883_v62 = vld [vmem:[#allocation5 + $0x28c] ss:$16 sps:$4 sm:$0xff]   ;;  %v3878_v53 = vld [vmem:[#allocation5 + $0x280] ss:$16 sps:$4 sm:$0xff]  }
 0x426   :  { %v1337_v24 = vadd.f32 %v1329_v10, %v1274_v5  ;;  %v1336_v25 = vadd.f32 %v1328_v14, %v1273_v56  ;;  %v1339_v26 = vadd.f32 %v1331_v15, %v1276_v7  ;;  %v1338_v27 = vadd.f32 %v1330_v17, %v1275_v41  ;;  %v3857_v41 = vld [vmem:[#allocation5 + $0x208] ss:$16 sps:$4 sm:$0xff]   ;;  %v3889_v1 = vld [vmem:[#allocation5 + $0x2ac] ss:$16 sps:$4 sm:$0xff]   ;;  %v3884_v2 = vld [vmem:[#allocation5 + $0x2a0] ss:$16 sps:$4 sm:$0xff]  }
 0x427   :  { %v1341_v28 = vadd.f32 %v1333_v20, %v1278_v43  ;;  %v1340_v29 = vadd.f32 %v1332_v21, %v1277_v45  ;;  %v1343_v11 = vadd.f32 %v1335_v22, %v1280_v46  ;;  %v1342_v31 = vadd.f32 %v1334_v23, %v1279_v47  ;;  %v3862_v45 = vld [vmem:[#allocation5 + $0x224] ss:$16 sps:$4 sm:$0xff]   ;;  %v3865_v46 = vld [vmem:[#allocation5 + $0x22c] ss:$16 sps:$4 sm:$0xff]   ;;  %v3893_v51 = vld [vmem:[#allocation5 + $0x2c8] ss:$16 sps:$4 sm:$0xff]  }
 0x428   :  { %v1387_v9 = vadd.f32 %v1353_v61, %v1337_v24  ;;  %v1386_v44 = vadd.f32 %v1349_v63, %v1336_v25  ;;  %v1389_v0 = vadd.f32 %v1361_v42, %v1339_v26  ;;  %v4593_v32 = vadd.f32 %v1357_v6, %v1338_v27  ;;  %v3875_v61 = vld [vmem:[#allocation5 + $0x268] ss:$16 sps:$4 sm:$0xff]   ;;  %v3886_v42 = vld [vmem:[#allocation5 + $0x2a4] ss:$16 sps:$4 sm:$0xff]   ;;  %v3901_v56 = vld [vmem:[#allocation5 + $0x2ec] ss:$16 sps:$4 sm:$0xff]  }
 0x429   :  { %v4595_v33 = vadd.f32 %v1369_v3, %v1341_v28  ;;  %v4597_v34 = vadd.f32 %v1365_v13, %v1340_v29  ;;  %v4599_v36 = vadd.f32 %v1377_v48, %v1343_v11  ;;  %v4601_v37 = vadd.f32 %v1373_v60, %v1342_v31  ;;  %v3881_v63 = vld [vmem:[#allocation5 + $0x288] ss:$16 sps:$4 sm:$0xff]   ;;  %v3892_v3 = vld [vmem:[#allocation5 + $0x2c4] ss:$16 sps:$4 sm:$0xff]   ;;  %v3895_v13 = vld [vmem:[#allocation5 + $0x2cc] ss:$16 sps:$4 sm:$0xff]  }
 0x42a   :  { %v1395_v4 = vmax.f32 %v1387_v9, 0.0  ;;  %v1394_v39 = vmax.f32 %v1386_v44, 0.0  ;;  %v1397_v35 = vmax.f32 %v1389_v0, 0.0  ;;  %v3887_v6 = vld [vmem:[#allocation5 + $0x2a8] ss:$16 sps:$4 sm:$0xff]  }
 0x42b   :  { %v3890_v48 = vld [vmem:[#allocation5 + $0x2c0] ss:$16 sps:$4 sm:$0xff]   ;;  %v3898_v5 = vld [vmem:[#allocation5 + $0x2e4] ss:$16 sps:$4 sm:$0xff]   ;;  %v3899_v60 = vld [vmem:[#allocation5 + $0x2e8] ss:$16 sps:$4 sm:$0xff]  }
 0x42c   :  { %v1403_v40 = vpack.c.bf16 %v1395_v4, %v1395_v4  ;;  %v1402_v43 = vpack.c.bf16 %v1394_v39, %v1394_v39  ;;  %v1405_v47 = vpack.c.bf16 %v1397_v35, %v1397_v35  ;;  %v3896_v7 = vld [vmem:[#allocation5 + $0x2e0] ss:$16 sps:$4 sm:$0xff]   ;;  %v3904_v10 = vld [vmem:[#allocation5 + $0x304] ss:$16 sps:$4 sm:$0xff]   ;;  %v3907_v14 = vld [vmem:[#allocation5 + $0x30c] ss:$16 sps:$4 sm:$0xff]  }
 0x42d   :  { %v3902_v15 = vld [vmem:[#allocation5 + $0x300] ss:$16 sps:$4 sm:$0xff]   ;;  %v3905_v17 = vld [vmem:[#allocation5 + $0x308] ss:$16 sps:$4 sm:$0xff]   ;;  %v3910_v20 = vld [vmem:[#allocation5 + $0x324] ss:$16 sps:$4 sm:$0xff]  }
 0x42e   :  { %3000 = vmatprep.mubr.bf16.mxu0 %v1403_v40  ;;  %3164 = vmatprep.mubr.bf16.mxu1 %v1403_v40  ;;  %v3913_v21 = vld [vmem:[#allocation5 + $0x32c] ss:$16 sps:$4 sm:$0xff]   ;;  %v3908_v22 = vld [vmem:[#allocation5 + $0x320] ss:$16 sps:$4 sm:$0xff]   ;;  %v3911_v23 = vld [vmem:[#allocation5 + $0x328] ss:$16 sps:$4 sm:$0xff]  }
 0x42f   :  { %3001 = vmatmul.mubr.bf16.vlgmr.msra.gmra.mrb[8].mxu0 %v1402_v43  ;;  %3165 = vmatmul.mubr.bf16.vlgmr.msra.gmra.mrb[8].mxu1 %v1402_v43  ;;  %v3916_v24 = vld [vmem:[#allocation5 + $0x344] ss:$16 sps:$4 sm:$0xff]   ;;  %v3919_v25 = vld [vmem:[#allocation5 + $0x34c] ss:$16 sps:$4 sm:$0xff]   ;;  %v3914_v26 = vld [vmem:[#allocation5 + $0x340] ss:$16 sps:$4 sm:$0xff]  }
 0x430   :  { %3010 = vmatpush1.bf16.msra.mxu0 %v3854_v57  ;;  %3174 = vmatpush1.bf16.msra.mxu1 %v3857_v41  ;;  %v3917_v27 = vld [vmem:[#allocation5 + $0x348] ss:$16 sps:$4 sm:$0xff]   ;;  %v3922_v28 = vld [vmem:[#allocation5 + $0x364] ss:$16 sps:$4 sm:$0xff]   ;;  %v3925_v29 = vld [vmem:[#allocation5 + $0x36c] ss:$16 sps:$4 sm:$0xff]  }
 0x431   :  { %3041 = vmatprep.mubr.bf16.mxu0 %v1405_v47  ;;  %3205 = vmatprep.mubr.bf16.mxu1 %v1405_v47  ;;  %v3920_v11 = vld [vmem:[#allocation5 + $0x360] ss:$16 sps:$4 sm:$0xff]   ;;  %v3923_v31 = vld [vmem:[#allocation5 + $0x368] ss:$16 sps:$4 sm:$0xff]   ;;  %v3928_v9 = vld [vmem:[#allocation5 + $0x384] ss:$16 sps:$4 sm:$0xff]  }
 0x432   :  { %3011 = vmatprep.subr.bf16.mxu0 %v3862_v45  ;;  %3175 = vmatprep.subr.bf16.mxu1 %v3865_v46  ;;  %v3931_v44 = vld [vmem:[#allocation5 + $0x38c] ss:$16 sps:$4 sm:$0xff]   ;;  %v3926_v0 = vld [vmem:[#allocation5 + $0x380] ss:$16 sps:$4 sm:$0xff]   ;;  %v3929_v4 = vld [vmem:[#allocation5 + $0x388] ss:$16 sps:$4 sm:$0xff]  }
 0x433   :  { %v3934_v39 = vld [vmem:[#allocation5 + $0x3a4] ss:$16 sps:$4 sm:$0xff]   ;;  %v3937_v35 = vld [vmem:[#allocation5 + $0x3ac] ss:$16 sps:$4 sm:$0xff]   ;;  %v3932_v40 = vld [vmem:[#allocation5 + $0x3a0] ss:$16 sps:$4 sm:$0xff]  }
 0x434   :  { %3012 = vmatpush1.bf16.msra.mxu0 %v3860_v52  ;;  %3176 = vmatpush1.bf16.msra.mxu1 %v3863_v16  ;;  %v3935_v57 = vld [vmem:[#allocation5 + $0x3a8] ss:$16 sps:$4 sm:$0xff]   ;;  %v3940_v41 = vld [vmem:[#allocation5 + $0x3c4] ss:$16 sps:$4 sm:$0xff]   ;;  %v3943_v43 = vld [vmem:[#allocation5 + $0x3cc] ss:$16 sps:$4 sm:$0xff]  }
 0x435   :  { %3013 = vmatprep.subr.bf16.mxu0 %v3868_v18  ;;  %3177 = vmatprep.subr.bf16.mxu1 %v3871_v19  ;;  %v3938_v45 = vld [vmem:[#allocation5 + $0x3c0] ss:$16 sps:$4 sm:$0xff]   ;;  %v3941_v46 = vld [vmem:[#allocation5 + $0x3c8] ss:$16 sps:$4 sm:$0xff]   ;;  %v3946_v47 = vld [vmem:[#allocation5 + $0x3e4] ss:$16 sps:$4 sm:$0xff]  }
 0x436   :  { %v3949_v52 = vld [vmem:[#allocation5 + $0x3ec] ss:$16 sps:$4 sm:$0xff]   ;;  %v3944_v16 = vld [vmem:[#allocation5 + $0x3e0] ss:$16 sps:$4 sm:$0xff]   ;;  %v3947_v18 = vld [vmem:[#allocation5 + $0x3e8] ss:$16 sps:$4 sm:$0xff]  }
 0x437   :  { %v1396_v19 = vmax.f32 %v4593_v32, 0.0  ;;  %v3959_v32 = vld [vmem:[#allocation5 + $0x428] ss:$16 sps:$4 sm:$0xff]  }
 0x438   :  { %3014 = vmatpush1.bf16.msra.mxu0 %v3866_v30  ;;  %3178 = vmatpush1.bf16.msra.mxu1 %v3869_v8  ;;  %v3952_v30 = vld [vmem:[#allocation5 + $0x404] ss:$16 sps:$4 sm:$0xff]   ;;  %v3955_v8 = vld [vmem:[#allocation5 + $0x40c] ss:$16 sps:$4 sm:$0xff]  }
 0x439   :  { %3015 = vmatprep.subr.bf16.mxu0 %v3874_v54  ;;  %3179 = vmatprep.subr.bf16.mxu1 %v3877_v58  ;;  %v1399_v54 = vmax.f32 %v4595_v33, 0.0  ;;  %v3950_v58 = vld [vmem:[#allocation5 + $0x400] ss:$16 sps:$4 sm:$0xff]   ;;  %v3967_v33 = vld [vmem:[#allocation5 + $0x44c] ss:$16 sps:$4 sm:$0xff]  }
 0x43c   :  { %3016 = vmatpush1.bf16.msra.mxu0 %v3872_v59  ;;  %3180 = vmatpush1.bf16.msra.mxu1 %v3875_v61  ;;  %v1404_v59 = vpack.c.bf16 %v1396_v19, %v1396_v19  ;;  %v3953_v61 = vld [vmem:[#allocation5 + $0x408] ss:$16 sps:$4 sm:$0xff]   ;;  %v4033_v19 = vld [vmem:[#allocation5 + $0x5ac] ss:$16 sps:$4 sm:$0xff]  }
 0x43d   :  { %3017 = vmatprep.subr.bf16.mxu0 %v3880_v38  ;;  %3181 = vmatprep.subr.bf16.mxu1 %v3883_v62  ;;  %v1407_v38 = vpack.c.bf16 %v1399_v54, %v1399_v54  ;;  %v3958_v62 = vld [vmem:[#allocation5 + $0x424] ss:$16 sps:$4 sm:$0xff]  }
 0x43e   :  { %v4036_v54 = vld [vmem:[#allocation5 + $0x5c4] ss:$16 sps:$4 sm:$0xff]  }
 0x440   :  { %3018 = vmatpush1.bf16.msra.mxu0 %v3878_v53  ;;  %3182 = vmatpush1.bf16.msra.mxu1 %v3881_v63  ;;  %v3961_v53 = vld [vmem:[#allocation5 + $0x42c] ss:$16 sps:$4 sm:$0xff]   ;;  %v3956_v63 = vld [vmem:[#allocation5 + $0x420] ss:$16 sps:$4 sm:$0xff]  }
 0x441   :  { %3019 = vmatprep.subr.bf16.mxu0 %v3886_v42  ;;  %3183 = vmatprep.subr.bf16.mxu1 %v3889_v1  ;;  %v3964_v42 = vld [vmem:[#allocation5 + $0x444] ss:$16 sps:$4 sm:$0xff]   ;;  %v3962_v1 = vld [vmem:[#allocation5 + $0x440] ss:$16 sps:$4 sm:$0xff]  }
 0x444   :  { %3020 = vmatpush1.bf16.msra.mxu0 %v3884_v2  ;;  %3184 = vmatpush1.bf16.msra.mxu1 %v3887_v6  ;;  %v3965_v2 = vld [vmem:[#allocation5 + $0x448] ss:$16 sps:$4 sm:$0xff]   ;;  %v3970_v6 = vld [vmem:[#allocation5 + $0x464] ss:$16 sps:$4 sm:$0xff]  }
 0x445   :  { %3021 = vmatprep.subr.bf16.mxu0 %v3892_v3  ;;  %3185 = vmatprep.subr.bf16.mxu1 %v3895_v13  ;;  %v3973_v3 = vld [vmem:[#allocation5 + $0x46c] ss:$16 sps:$4 sm:$0xff]   ;;  %v3968_v13 = vld [vmem:[#allocation5 + $0x460] ss:$16 sps:$4 sm:$0xff]  }
 0x448   :  { %3022 = vmatpush1.bf16.msra.mxu0 %v3890_v48  ;;  %3186 = vmatpush1.bf16.msra.mxu1 %v3893_v51  ;;  %v3971_v48 = vld [vmem:[#allocation5 + $0x468] ss:$16 sps:$4 sm:$0xff]   ;;  %v3976_v51 = vld [vmem:[#allocation5 + $0x484] ss:$16 sps:$4 sm:$0xff]  }
 0x449   :  { %3023 = vmatprep.subr.bf16.mxu0 %v3898_v5  ;;  %3187 = vmatprep.subr.bf16.mxu1 %v3901_v56  ;;  %v3979_v5 = vld [vmem:[#allocation5 + $0x48c] ss:$16 sps:$4 sm:$0xff]   ;;  %v3974_v56 = vld [vmem:[#allocation5 + $0x480] ss:$16 sps:$4 sm:$0xff]  }
 0x44c   :  { %3024 = vmatpush1.bf16.msra.mxu0 %v3896_v7  ;;  %3188 = vmatpush1.bf16.msra.mxu1 %v3899_v60  ;;  %v3977_v7 = vld [vmem:[#allocation5 + $0x488] ss:$16 sps:$4 sm:$0xff]   ;;  %v3982_v60 = vld [vmem:[#allocation5 + $0x4a4] ss:$16 sps:$4 sm:$0xff]  }
 0x44d   :  { %3025 = vmatprep.subr.bf16.mxu0 %v3904_v10  ;;  %3189 = vmatprep.subr.bf16.mxu1 %v3907_v14  ;;  %v3985_v10 = vld [vmem:[#allocation5 + $0x4ac] ss:$16 sps:$4 sm:$0xff]   ;;  %v3980_v14 = vld [vmem:[#allocation5 + $0x4a0] ss:$16 sps:$4 sm:$0xff]  }
 0x450   :  { %3026 = vmatpush1.bf16.msra.mxu0 %v3902_v15  ;;  %3190 = vmatpush1.bf16.msra.mxu1 %v3905_v17  ;;  %v3983_v15 = vld [vmem:[#allocation5 + $0x4a8] ss:$16 sps:$4 sm:$0xff]   ;;  %v3988_v17 = vld [vmem:[#allocation5 + $0x4c4] ss:$16 sps:$4 sm:$0xff]  }
 0x451   :  { %3027 = vmatprep.subr.bf16.mxu0 %v3910_v20  ;;  %3191 = vmatprep.subr.bf16.mxu1 %v3913_v21  ;;  %v3991_v20 = vld [vmem:[#allocation5 + $0x4cc] ss:$16 sps:$4 sm:$0xff]   ;;  %v3986_v21 = vld [vmem:[#allocation5 + $0x4c0] ss:$16 sps:$4 sm:$0xff]  }
 0x454   :  { %3028 = vmatpush1.bf16.msra.mxu0 %v3908_v22  ;;  %3192 = vmatpush1.bf16.msra.mxu1 %v3911_v23  ;;  %v3989_v22 = vld [vmem:[#allocation5 + $0x4c8] ss:$16 sps:$4 sm:$0xff]   ;;  %v3994_v23 = vld [vmem:[#allocation5 + $0x4e4] ss:$16 sps:$4 sm:$0xff]  }
 0x455   :  { %3029 = vmatprep.subr.bf16.mxu0 %v3916_v24  ;;  %3193 = vmatprep.subr.bf16.mxu1 %v3919_v25  ;;  %v3997_v24 = vld [vmem:[#allocation5 + $0x4ec] ss:$16 sps:$4 sm:$0xff]   ;;  %v3992_v25 = vld [vmem:[#allocation5 + $0x4e0] ss:$16 sps:$4 sm:$0xff]  }
 0x458   :  { %3030 = vmatpush1.bf16.msra.mxu0 %v3914_v26  ;;  %3194 = vmatpush1.bf16.msra.mxu1 %v3917_v27  ;;  %v3995_v26 = vld [vmem:[#allocation5 + $0x4e8] ss:$16 sps:$4 sm:$0xff]   ;;  %v4000_v27 = vld [vmem:[#allocation5 + $0x504] ss:$16 sps:$4 sm:$0xff]  }
 0x459   :  { %3031 = vmatprep.subr.bf16.mxu0 %v3922_v28  ;;  %3195 = vmatprep.subr.bf16.mxu1 %v3925_v29  ;;  %v4003_v28 = vld [vmem:[#allocation5 + $0x50c] ss:$16 sps:$4 sm:$0xff]   ;;  %v3998_v29 = vld [vmem:[#allocation5 + $0x500] ss:$16 sps:$4 sm:$0xff]  }
 0x45c   :  { %3032 = vmatpush1.bf16.msra.mxu0 %v3920_v11  ;;  %3196 = vmatpush1.bf16.msra.mxu1 %v3923_v31  ;;  %v4001_v11 = vld [vmem:[#allocation5 + $0x508] ss:$16 sps:$4 sm:$0xff]   ;;  %v4006_v31 = vld [vmem:[#allocation5 + $0x524] ss:$16 sps:$4 sm:$0xff]  }
 0x45d   :  { %3033 = vmatprep.subr.bf16.mxu0 %v3928_v9  ;;  %3197 = vmatprep.subr.bf16.mxu1 %v3931_v44  ;;  %v4009_v9 = vld [vmem:[#allocation5 + $0x52c] ss:$16 sps:$4 sm:$0xff]   ;;  %v4004_v44 = vld [vmem:[#allocation5 + $0x520] ss:$16 sps:$4 sm:$0xff]  }
 0x460   :  { %3034 = vmatpush1.bf16.msra.mxu0 %v3926_v0  ;;  %3198 = vmatpush1.bf16.msra.mxu1 %v3929_v4  ;;  %v4007_v0 = vld [vmem:[#allocation5 + $0x528] ss:$16 sps:$4 sm:$0xff]   ;;  %v4012_v4 = vld [vmem:[#allocation5 + $0x544] ss:$16 sps:$4 sm:$0xff]  }
 0x461   :  { %3035 = vmatprep.subr.bf16.mxu0 %v3934_v39  ;;  %3199 = vmatprep.subr.bf16.mxu1 %v3937_v35  ;;  %v4015_v39 = vld [vmem:[#allocation5 + $0x54c] ss:$16 sps:$4 sm:$0xff]   ;;  %v4010_v35 = vld [vmem:[#allocation5 + $0x540] ss:$16 sps:$4 sm:$0xff]  }
 0x464   :  { %3036 = vmatpush1.bf16.msra.mxu0 %v3932_v40  ;;  %3200 = vmatpush1.bf16.msra.mxu1 %v3935_v57  ;;  %v4013_v40 = vld [vmem:[#allocation5 + $0x548] ss:$16 sps:$4 sm:$0xff]   ;;  %v4018_v57 = vld [vmem:[#allocation5 + $0x564] ss:$16 sps:$4 sm:$0xff]  }
 0x465   :  { %3037 = vmatprep.subr.bf16.mxu0 %v3940_v41  ;;  %3201 = vmatprep.subr.bf16.mxu1 %v3943_v43  ;;  %v4021_v41 = vld [vmem:[#allocation5 + $0x56c] ss:$16 sps:$4 sm:$0xff]   ;;  %v4016_v43 = vld [vmem:[#allocation5 + $0x560] ss:$16 sps:$4 sm:$0xff]  }
 0x468   :  { %3038 = vmatpush1.bf16.msra.mxu0 %v3938_v45  ;;  %3202 = vmatpush1.bf16.msra.mxu1 %v3941_v46  ;;  %v4019_v45 = vld [vmem:[#allocation5 + $0x568] ss:$16 sps:$4 sm:$0xff]   ;;  %v4024_v46 = vld [vmem:[#allocation5 + $0x584] ss:$16 sps:$4 sm:$0xff]  }
 0x469   :  { %3039 = vmatprep.subr.bf16.mxu0 %v3946_v47  ;;  %3203 = vmatprep.subr.bf16.mxu1 %v3949_v52  ;;  %v4027_v47 = vld [vmem:[#allocation5 + $0x58c] ss:$16 sps:$4 sm:$0xff]   ;;  %v4022_v52 = vld [vmem:[#allocation5 + $0x580] ss:$16 sps:$4 sm:$0xff]  }
 0x46c   :  { %3040 = vmatpush1.bf16.msra.mxu0 %v3944_v16  ;;  %3204 = vmatpush1.bf16.msra.mxu1 %v3947_v18  ;;  %v4025_v16 = vld [vmem:[#allocation5 + $0x588] ss:$16 sps:$4 sm:$0xff]   ;;  %v4030_v18 = vld [vmem:[#allocation5 + $0x5a4] ss:$16 sps:$4 sm:$0xff]  }
 0x46d   :  { %3050 = vmatprep.subr.bf16.mxu0 %v3952_v30  ;;  %3214 = vmatprep.subr.bf16.mxu1 %v3955_v8  ;;  %v4028_v30 = vld [vmem:[#allocation5 + $0x5a0] ss:$16 sps:$4 sm:$0xff]   ;;  %v4031_v8 = vld [vmem:[#allocation5 + $0x5a8] ss:$16 sps:$4 sm:$0xff]  }
 0x46f   :  { %3042 = vmatmul.mubr.bf16.vlgmr.msra.gmra.mrb[8].mxu0 %v1404_v59  ;;  %3206 = vmatmul.mubr.bf16.vlgmr.msra.gmra.mrb[8].mxu1 %v1404_v59  ;;  %v4034_v59 = vld [vmem:[#allocation5 + $0x5c0] ss:$16 sps:$4 sm:$0xff]  }
 0x470   :  { %3051 = vmatpush1.bf16.msra.mxu0 %v3950_v58  ;;  %3082 = vmatprep.mubr.bf16.mxu0 %v1407_v38  ;;  %v4039_v58 = vld [vmem:[#allocation5 + $0x5cc] ss:$16 sps:$4 sm:$0xff]  }
 0x471   :  { %3215 = vmatpush1.bf16.msra.mxu1 %v3953_v61  ;;  %3246 = vmatprep.mubr.bf16.mxu1 %v1407_v38  ;;  %v4037_v61 = vld [vmem:[#allocation5 + $0x5c8] ss:$16 sps:$4 sm:$0xff]   ;;  %v4042_v38 = vld [vmem:[#allocation5 + $0x5e4] ss:$16 sps:$4 sm:$0xff]  }
 0x472   :  { %3052 = vmatprep.subr.bf16.mxu0 %v3958_v62  ;;  %3216 = vmatprep.subr.bf16.mxu1 %v3961_v53  ;;  %v4045_v62 = vld [vmem:[#allocation5 + $0x5ec] ss:$16 sps:$4 sm:$0xff]   ;;  %v4040_v53 = vld [vmem:[#allocation5 + $0x5e0] ss:$16 sps:$4 sm:$0xff]  }
 0x474   :  { %3053 = vmatpush1.bf16.msra.mxu0 %v3956_v63  ;;  %v4043_v63 = vld [vmem:[#allocation5 + $0x5e8] ss:$16 sps:$4 sm:$0xff]  }
 0x475   :  { %3217 = vmatpush1.bf16.msra.mxu1 %v3959_v32  ;;  %3054 = vmatprep.subr.bf16.mxu0 %v3964_v42  ;;  %v1398_v32 = vmax.f32 %v4597_v34, 0.0  ;;  %v4048_v42 = vld [vmem:[#allocation5 + $0x604] ss:$16 sps:$4 sm:$0xff]   ;;  %v4055_v34 = vld [vmem:[#allocation5 + $0x628] ss:$16 sps:$4 sm:$0xff]  }
 0x476   :  { %3218 = vmatprep.subr.bf16.mxu1 %v3967_v33  ;;  %v4051_v33 = vld [vmem:[#allocation5 + $0x60c] ss:$16 sps:$4 sm:$0xff]  }
 0x478   :  { %3055 = vmatpush1.bf16.msra.mxu0 %v3962_v1  ;;  %v1401_v1 = vmax.f32 %v4599_v36, 0.0  ;;  %v4063_v36 = vld [vmem:[#allocation5 + $0x64c] ss:$16 sps:$4 sm:$0xff]  }
 0x479   :  { %3219 = vmatpush1.bf16.msra.mxu1 %v3965_v2  ;;  %3056 = vmatprep.subr.bf16.mxu0 %v3970_v6  ;;  %v4046_v2 = vld [vmem:[#allocation5 + $0x600] ss:$16 sps:$4 sm:$0xff]   ;;  %v1406_v6 = vpack.c.bf16 %v1398_v32, %v1398_v32  ;;  %v4127_v32 = vld [vmem:[#allocation5 + $0x7a8] ss:$16 sps:$4 sm:$0xff]  }
 0x47a   :  { %3220 = vmatprep.subr.bf16.mxu1 %v3973_v3  ;;  %v4049_v3 = vld [vmem:[#allocation5 + $0x608] ss:$16 sps:$4 sm:$0xff]  }
 0x47c   :  { %3057 = vmatpush1.bf16.msra.mxu0 %v3968_v13  ;;  %v4054_v13 = vld [vmem:[#allocation5 + $0x624] ss:$16 sps:$4 sm:$0xff]  }
 0x47d   :  { %3221 = vmatpush1.bf16.msra.mxu1 %v3971_v48  ;;  %3058 = vmatprep.subr.bf16.mxu0 %v3976_v51  ;;  %v1409_v48 = vpack.c.bf16 %v1401_v1, %v1401_v1  ;;  %v4057_v51 = vld [vmem:[#allocation5 + $0x62c] ss:$16 sps:$4 sm:$0xff]   ;;  %v4130_v1 = vld [vmem:[#allocation5 + $0x7c0] ss:$16 sps:$4 sm:$0xff]  }
 0x47e   :  { %3222 = vmatprep.subr.bf16.mxu1 %v3979_v5  ;;  %v4052_v5 = vld [vmem:[#allocation5 + $0x620] ss:$16 sps:$4 sm:$0xff]  }
 0x480   :  { %3059 = vmatpush1.bf16.msra.mxu0 %v3974_v56  ;;  %v4060_v56 = vld [vmem:[#allocation5 + $0x644] ss:$16 sps:$4 sm:$0xff]  }
 0x481   :  { %3223 = vmatpush1.bf16.msra.mxu1 %v3977_v7  ;;  %3060 = vmatprep.subr.bf16.mxu0 %v3982_v60  ;;  %v4058_v7 = vld [vmem:[#allocation5 + $0x640] ss:$16 sps:$4 sm:$0xff]   ;;  %v4061_v60 = vld [vmem:[#allocation5 + $0x648] ss:$16 sps:$4 sm:$0xff]  }
 0x482   :  { %3224 = vmatprep.subr.bf16.mxu1 %v3985_v10  ;;  %v4066_v10 = vld [vmem:[#allocation5 + $0x664] ss:$16 sps:$4 sm:$0xff]  }
 0x484   :  { %3061 = vmatpush1.bf16.msra.mxu0 %v3980_v14  ;;  %v4069_v14 = vld [vmem:[#allocation5 + $0x66c] ss:$16 sps:$4 sm:$0xff]  }
 0x485   :  { %3225 = vmatpush1.bf16.msra.mxu1 %v3983_v15  ;;  %3062 = vmatprep.subr.bf16.mxu0 %v3988_v17  ;;  %v4064_v15 = vld [vmem:[#allocation5 + $0x660] ss:$16 sps:$4 sm:$0xff]   ;;  %v4067_v17 = vld [vmem:[#allocation5 + $0x668] ss:$16 sps:$4 sm:$0xff]  }
 0x486   :  { %3226 = vmatprep.subr.bf16.mxu1 %v3991_v20  ;;  %v4072_v20 = vld [vmem:[#allocation5 + $0x684] ss:$16 sps:$4 sm:$0xff]  }
 0x488   :  { %3063 = vmatpush1.bf16.msra.mxu0 %v3986_v21  ;;  %v4075_v21 = vld [vmem:[#allocation5 + $0x68c] ss:$16 sps:$4 sm:$0xff]  }
 0x489   :  { %3227 = vmatpush1.bf16.msra.mxu1 %v3989_v22  ;;  %3064 = vmatprep.subr.bf16.mxu0 %v3994_v23  ;;  %v4070_v22 = vld [vmem:[#allocation5 + $0x680] ss:$16 sps:$4 sm:$0xff]   ;;  %v4073_v23 = vld [vmem:[#allocation5 + $0x688] ss:$16 sps:$4 sm:$0xff]  }
 0x48a   :  { %3228 = vmatprep.subr.bf16.mxu1 %v3997_v24  ;;  %v4078_v24 = vld [vmem:[#allocation5 + $0x6a4] ss:$16 sps:$4 sm:$0xff]  }
 0x48c   :  { %3065 = vmatpush1.bf16.msra.mxu0 %v3992_v25  ;;  %v4081_v25 = vld [vmem:[#allocation5 + $0x6ac] ss:$16 sps:$4 sm:$0xff]  }
 0x48d   :  { %3229 = vmatpush1.bf16.msra.mxu1 %v3995_v26  ;;  %3066 = vmatprep.subr.bf16.mxu0 %v4000_v27  ;;  %v4076_v26 = vld [vmem:[#allocation5 + $0x6a0] ss:$16 sps:$4 sm:$0xff]   ;;  %v4079_v27 = vld [vmem:[#allocation5 + $0x6a8] ss:$16 sps:$4 sm:$0xff]  }
 0x48e   :  { %3230 = vmatprep.subr.bf16.mxu1 %v4003_v28  ;;  %v4084_v28 = vld [vmem:[#allocation5 + $0x6c4] ss:$16 sps:$4 sm:$0xff]  }
 0x490   :  { %3067 = vmatpush1.bf16.msra.mxu0 %v3998_v29  ;;  %v4087_v29 = vld [vmem:[#allocation5 + $0x6cc] ss:$16 sps:$4 sm:$0xff]  }
 0x491   :  { %3231 = vmatpush1.bf16.msra.mxu1 %v4001_v11  ;;  %3068 = vmatprep.subr.bf16.mxu0 %v4006_v31  ;;  %v4082_v11 = vld [vmem:[#allocation5 + $0x6c0] ss:$16 sps:$4 sm:$0xff]   ;;  %v4085_v31 = vld [vmem:[#allocation5 + $0x6c8] ss:$16 sps:$4 sm:$0xff]  }
 0x492   :  { %3232 = vmatprep.subr.bf16.mxu1 %v4009_v9  ;;  %v4090_v9 = vld [vmem:[#allocation5 + $0x6e4] ss:$16 sps:$4 sm:$0xff]  }
 0x494   :  { %3069 = vmatpush1.bf16.msra.mxu0 %v4004_v44  ;;  %v4093_v44 = vld [vmem:[#allocation5 + $0x6ec] ss:$16 sps:$4 sm:$0xff]  }
 0x495   :  { %3233 = vmatpush1.bf16.msra.mxu1 %v4007_v0  ;;  %3070 = vmatprep.subr.bf16.mxu0 %v4012_v4  ;;  %v4088_v0 = vld [vmem:[#allocation5 + $0x6e0] ss:$16 sps:$4 sm:$0xff]   ;;  %v4091_v4 = vld [vmem:[#allocation5 + $0x6e8] ss:$16 sps:$4 sm:$0xff]  }
 0x496   :  { %3234 = vmatprep.subr.bf16.mxu1 %v4015_v39  ;;  %v4096_v39 = vld [vmem:[#allocation5 + $0x704] ss:$16 sps:$4 sm:$0xff]  }
 0x498   :  { %3071 = vmatpush1.bf16.msra.mxu0 %v4010_v35  ;;  %v4099_v35 = vld [vmem:[#allocation5 + $0x70c] ss:$16 sps:$4 sm:$0xff]  }
 0x499   :  { %3235 = vmatpush1.bf16.msra.mxu1 %v4013_v40  ;;  %3072 = vmatprep.subr.bf16.mxu0 %v4018_v57  ;;  %v4094_v40 = vld [vmem:[#allocation5 + $0x700] ss:$16 sps:$4 sm:$0xff]   ;;  %v4097_v57 = vld [vmem:[#allocation5 + $0x708] ss:$16 sps:$4 sm:$0xff]  }
 0x49a   :  { %3236 = vmatprep.subr.bf16.mxu1 %v4021_v41  ;;  %v4102_v41 = vld [vmem:[#allocation5 + $0x724] ss:$16 sps:$4 sm:$0xff]  }
 0x49c   :  { %3073 = vmatpush1.bf16.msra.mxu0 %v4016_v43  ;;  %v4105_v43 = vld [vmem:[#allocation5 + $0x72c] ss:$16 sps:$4 sm:$0xff]  }
 0x49d   :  { %3237 = vmatpush1.bf16.msra.mxu1 %v4019_v45  ;;  %3074 = vmatprep.subr.bf16.mxu0 %v4024_v46  ;;  %v4100_v45 = vld [vmem:[#allocation5 + $0x720] ss:$16 sps:$4 sm:$0xff]   ;;  %v4103_v46 = vld [vmem:[#allocation5 + $0x728] ss:$16 sps:$4 sm:$0xff]  }
 0x49e   :  { %3238 = vmatprep.subr.bf16.mxu1 %v4027_v47  ;;  %v4108_v47 = vld [vmem:[#allocation5 + $0x744] ss:$16 sps:$4 sm:$0xff]  }
 0x4a0   :  { %3075 = vmatpush1.bf16.msra.mxu0 %v4022_v52  ;;  %v4111_v52 = vld [vmem:[#allocation5 + $0x74c] ss:$16 sps:$4 sm:$0xff]  }
 0x4a1   :  { %3239 = vmatpush1.bf16.msra.mxu1 %v4025_v16  ;;  %3076 = vmatprep.subr.bf16.mxu0 %v4030_v18  ;;  %v4106_v16 = vld [vmem:[#allocation5 + $0x740] ss:$16 sps:$4 sm:$0xff]   ;;  %v4109_v18 = vld [vmem:[#allocation5 + $0x748] ss:$16 sps:$4 sm:$0xff]  }
 0x4a2   :  { %3240 = vmatprep.subr.bf16.mxu1 %v4033_v19  ;;  %v4114_v19 = vld [vmem:[#allocation5 + $0x764] ss:$16 sps:$4 sm:$0xff]  }
 0x4a4   :  { %3077 = vmatpush1.bf16.msra.mxu0 %v4028_v30  ;;  %v4117_v30 = vld [vmem:[#allocation5 + $0x76c] ss:$16 sps:$4 sm:$0xff]  }
 0x4a5   :  { %3241 = vmatpush1.bf16.msra.mxu1 %v4031_v8  ;;  %3078 = vmatprep.subr.bf16.mxu0 %v4036_v54  ;;  %v4112_v8 = vld [vmem:[#allocation5 + $0x760] ss:$16 sps:$4 sm:$0xff]   ;;  %v4115_v54 = vld [vmem:[#allocation5 + $0x768] ss:$16 sps:$4 sm:$0xff]  }
 0x4a6   :  { %3242 = vmatprep.subr.bf16.mxu1 %v4039_v58  ;;  %v4120_v58 = vld [vmem:[#allocation5 + $0x784] ss:$16 sps:$4 sm:$0xff]  }
 0x4a8   :  { %3079 = vmatpush1.bf16.msra.mxu0 %v4034_v59  ;;  %v4123_v59 = vld [vmem:[#allocation5 + $0x78c] ss:$16 sps:$4 sm:$0xff]  }
 0x4a9   :  { %3243 = vmatpush1.bf16.msra.mxu1 %v4037_v61  ;;  %3080 = vmatprep.subr.bf16.mxu0 %v4042_v38  ;;  %v4118_v61 = vld [vmem:[#allocation5 + $0x780] ss:$16 sps:$4 sm:$0xff]   ;;  %v4121_v38 = vld [vmem:[#allocation5 + $0x788] ss:$16 sps:$4 sm:$0xff]  }
 0x4aa   :  { %3244 = vmatprep.subr.bf16.mxu1 %v4045_v62  ;;  %v4126_v62 = vld [vmem:[#allocation5 + $0x7a4] ss:$16 sps:$4 sm:$0xff]  }
 0x4ac   :  { %3081 = vmatpush1.bf16.msra.mxu0 %v4040_v53  ;;  %v4129_v53 = vld [vmem:[#allocation5 + $0x7ac] ss:$16 sps:$4 sm:$0xff]  }
 0x4ad   :  { %3245 = vmatpush1.bf16.msra.mxu1 %v4043_v63  ;;  %3091 = vmatprep.subr.bf16.mxu0 %v4048_v42  ;;  %v4124_v63 = vld [vmem:[#allocation5 + $0x7a0] ss:$16 sps:$4 sm:$0xff]   ;;  %v4132_v42 = vld [vmem:[#allocation5 + $0x7c4] ss:$16 sps:$4 sm:$0xff]  }
 0x4ae   :  { %3255 = vmatprep.subr.bf16.mxu1 %v4051_v33  ;;  %v4135_v33 = vld [vmem:[#allocation5 + $0x7cc] ss:$16 sps:$4 sm:$0xff]  }
 0x4af   :  { %3083 = vmatmul.mubr.bf16.vlgmr.msra.gmra.mrb[8].mxu0 %v1406_v6 }
 0x4b0   :  { %3247 = vmatmul.mubr.bf16.vlgmr.msra.gmra.mrb[8].mxu1 %v1406_v6  ;;  %3092 = vmatpush1.bf16.msra.mxu0 %v4046_v2  ;;  %v4133_v2 = vld [vmem:[#allocation5 + $0x7c8] ss:$16 sps:$4 sm:$0xff]   ;;  %v4138_v6 = vld [vmem:[#allocation5 + $0x7e4] ss:$16 sps:$4 sm:$0xff]  }
 0x4b1   :  { %3123 = vmatprep.mubr.bf16.mxu0 %v1409_v48  ;;  %3256 = vmatpush1.bf16.msra.mxu1 %v4049_v3  ;;  %v4141_v3 = vld [vmem:[#allocation5 + $0x7ec] ss:$16 sps:$4 sm:$0xff]  }
 0x4b2   :  { %3287 = vmatprep.mubr.bf16.mxu1 %v1409_v48  ;;  %3093 = vmatprep.subr.bf16.mxu0 %v4054_v13  ;;  %v4136_v13 = vld [vmem:[#allocation5 + $0x7e0] ss:$16 sps:$4 sm:$0xff]   ;;  %v4139_v48 = vld [vmem:[#allocation5 + $0x7e8] ss:$16 sps:$4 sm:$0xff]  }
 0x4b3   :  { %3257 = vmatprep.subr.bf16.mxu1 %v4057_v51  ;;  %v1400_v51 = vmax.f32 %v4601_v37, 0.0 }
 0x4b4   :  { %3094 = vmatpush1.bf16.msra.mxu0 %v4052_v5 }
 0x4b5   :  { %3258 = vmatpush1.bf16.msra.mxu1 %v4055_v34  ;;  %3095 = vmatprep.subr.bf16.mxu0 %v4060_v56  ;;  %v1408_v5 = vpack.c.bf16 %v1400_v51, %v1400_v51  ;;  %v1666_v34 = vld [vmem:[%s4633_s8] sm:$0xf] }
 0x4b6   :  { %3259 = vmatprep.subr.bf16.mxu1 %v4063_v36  ;;  %v1671_v56 = vrot.slane %v1666_v34, %v4350_v12  ;;  %v3300_v36 = vld [vmem:[%s4634_s9] sm:$0xf]  ;;  %v1675_v37 = vrot.slane %v1666_v34, %v4564_v50 }
 0x4b8   :  { %3096 = vmatpush1.bf16.msra.mxu0 %v4058_v7  ;;  %v1679_v7 = vrot.slane %v1666_v34, %v4573_v55 }
 0x4b9   :  { %3260 = vmatpush1.bf16.msra.mxu1 %v4061_v60  ;;  %3097 = vmatprep.subr.bf16.mxu0 %v4066_v10  ;;  %v1683_v60 = vrot.slane %v1666_v34, %v4567_v49 }
 0x4ba   :  { %3261 = vmatprep.subr.bf16.mxu1 %v4069_v14 }
 0x4bc   :  { %3098 = vmatpush1.bf16.msra.mxu0 %v4064_v15  ;;  %v3305_v15 = vrot.slane %v3300_v36, %v4350_v12 }
 0x4bd   :  { %3262 = vmatpush1.bf16.msra.mxu1 %v4067_v17  ;;  %3099 = vmatprep.subr.bf16.mxu0 %v4072_v20 }
 0x4be   :  { %3263 = vmatprep.subr.bf16.mxu1 %v4075_v21 }
 0x4c0   :  { %3100 = vmatpush1.bf16.msra.mxu0 %v4070_v22 }
 0x4c1   :  { %3264 = vmatpush1.bf16.msra.mxu1 %v4073_v23  ;;  %3101 = vmatprep.subr.bf16.mxu0 %v4078_v24  ;;  %v3309_v23 = vrot.slane %v3300_v36, %v4564_v50 }
 0x4c2   :  { %3265 = vmatprep.subr.bf16.mxu1 %v4081_v25 }
 0x4c4   :  { %3102 = vmatpush1.bf16.msra.mxu0 %v4076_v26 }
 0x4c5   :  { %3266 = vmatpush1.bf16.msra.mxu1 %v4079_v27  ;;  %3103 = vmatprep.subr.bf16.mxu0 %v4084_v28 }
 0x4c6   :  { %3267 = vmatprep.subr.bf16.mxu1 %v4087_v29 }
 0x4c8   :  { %3104 = vmatpush1.bf16.msra.mxu0 %v4082_v11 }
 0x4c9   :  { %3268 = vmatpush1.bf16.msra.mxu1 %v4085_v31  ;;  %3105 = vmatprep.subr.bf16.mxu0 %v4090_v9  ;;  %v3313_v31 = vrot.slane %v3300_v36, %v4573_v55 }
 0x4ca   :  { %3269 = vmatprep.subr.bf16.mxu1 %v4093_v44 }
 0x4cc   :  { %3106 = vmatpush1.bf16.msra.mxu0 %v4088_v0 }
 0x4cd   :  { %3270 = vmatpush1.bf16.msra.mxu1 %v4091_v4  ;;  %3107 = vmatprep.subr.bf16.mxu0 %v4096_v39  ;;  %v3317_v39 = vrot.slane %v3300_v36, %v4567_v49 }
 0x4ce   :  { %3271 = vmatprep.subr.bf16.mxu1 %v4099_v35 }
 0x4d0   :  { %3108 = vmatpush1.bf16.msra.mxu0 %v4094_v40 }
 0x4d1   :  { %3272 = vmatpush1.bf16.msra.mxu1 %v4097_v57  ;;  %3109 = vmatprep.subr.bf16.mxu0 %v4102_v41 }
 0x4d2   :  { %3273 = vmatprep.subr.bf16.mxu1 %v4105_v43  ;;  %v3705_v43 = vld [vmem:[#allocation2] ss:$0 sm:$0xff] }
 0x4d4   :  { %3110 = vmatpush1.bf16.msra.mxu0 %v4100_v45 }
 0x4d5   :  { %3274 = vmatpush1.bf16.msra.mxu1 %v4103_v46  ;;  %3111 = vmatprep.subr.bf16.mxu0 %v4108_v47 }
 0x4d6   :  { %3275 = vmatprep.subr.bf16.mxu1 %v4111_v52 }
 0x4d8   :  { %3112 = vmatpush1.bf16.msra.mxu0 %v4106_v16 }
 0x4d9   :  { %3276 = vmatpush1.bf16.msra.mxu1 %v4109_v18  ;;  %3113 = vmatprep.subr.bf16.mxu0 %v4114_v19 }
 0x4da   :  { %3277 = vmatprep.subr.bf16.mxu1 %v4117_v30 }
 0x4dc   :  { %3114 = vmatpush1.bf16.msra.mxu0 %v4112_v8 }
 0x4dd   :  { %3278 = vmatpush1.bf16.msra.mxu1 %v4115_v54  ;;  %3115 = vmatprep.subr.bf16.mxu0 %v4120_v58 }
 0x4de   :  { %3279 = vmatprep.subr.bf16.mxu1 %v4123_v59 }
 0x4e0   :  { %3116 = vmatpush1.bf16.msra.mxu0 %v4118_v61 }
 0x4e1   :  { %3280 = vmatpush1.bf16.msra.mxu1 %v4121_v38  ;;  %3117 = vmatprep.subr.bf16.mxu0 %v4126_v62 }
 0x4e2   :  { %3281 = vmatprep.subr.bf16.mxu1 %v4129_v53 }
 0x4e4   :  { %3118 = vmatpush1.bf16.msra.mxu0 %v4124_v63 }
 0x4e5   :  { %3282 = vmatpush1.bf16.msra.mxu1 %v4127_v32  ;;  %3119 = vmatprep.subr.bf16.mxu0 %v4132_v42 }
 0x4e6   :  { %3283 = vmatprep.subr.bf16.mxu1 %v4135_v33 }
 0x4e8   :  { %3120 = vmatpush1.bf16.msra.mxu0 %v4130_v1 }
 0x4e9   :  { %3284 = vmatpush1.bf16.msra.mxu1 %v4133_v2  ;;  %3121 = vmatprep.subr.bf16.mxu0 %v4138_v6 }
 0x4ea   :  { %3285 = vmatprep.subr.bf16.mxu1 %v4141_v3 }
 0x4ec   :  { %3122 = vmatpush1.bf16.msra.mxu0 %v4136_v13 }
 0x4ed   :  { %3286 = vmatpush1.bf16.msra.mxu1 %v4139_v48 }
 0x4ef   :  { %3124 = vmatmul.mubr.bf16.vlgmr.msra.gmra.mrb[8].mxu0 %v1408_v5 }
 0x4f0   :  { %3288 = vmatmul.mubr.bf16.vlgmr.msra.gmra.mrb[8].mxu1 %v1408_v5 }
 0x5c2   :  { %v3125_v10 = vpop.f32.mrb[8].mxu0 }
 0x5c3   :  { %v3706_v14 = vadd.f32 %v3125_v10, %v1671_v56  ;;  %v3289_v17 = vpop.f32.mrb[8].mxu1  ;;  %v3127_v20 = vpop.f32.mrb[9].mxu0 }
 0x5c4   :  { %v3708_v21 = vadd.f32 %v3289_v17, %v1679_v7  ;;  %v3707_v22 = vadd.f32 %v3127_v20, %v1675_v37  ;;  %v3291_v24 = vpop.f32.mrb[9].mxu1  ;;  %v3129_v25 = vpop.f32.mrb[10].mxu0 }
 0x5c5   :  { %v3296_v26 = vmax.f32 %v3706_v14, 0.0  ;;  %v3709_v27 = vadd.f32 %v3291_v24, %v1683_v60  ;;  %v3293_v28 = vpop.f32.mrb[10].mxu1  ;;  %v3130_v29 = vpop.f32.mrb[11].mxu0 }
 0x5c6   :  { %v3298_v11 = vmax.f32 %v3708_v21, 0.0  ;;  %v3297_v9 = vmax.f32 %v3707_v22, 0.0  ;;  %v3294_v44 = vpop.f32.mrb[11].mxu1 }
 0x5c7   :  { %v3322_v0 = vmul.f32 %v3305_v15, %v3296_v26  ;;  %v3299_v12 = vmax.f32 %v3709_v27, 0.0 }
 0x5c8   :  { %v3323_v4 = vmul.f32 %v3309_v23, %v3297_v9  ;;  %v3324_v35 = vmul.f32 %v3313_v31, %v3298_v11 }
 0x5c9   :  { %v3325_v57 = vmul.f32 %v3317_v39, %v3299_v12 }
 0x5ca   :  { %v3326_v40 = vadd.f32 %v3323_v4, %v3322_v0 }
 0x5cc   :  { %v3327_v50 = vadd.f32 %v3326_v40, %v3324_v35 }
 0x5ce   :  { %v3328_v41 = vadd.f32 %v3327_v50, %v3325_v57 }
 0x5d0   :  { %3329 = vadd.xlane.f32.xlu1 %v3328_v41 }
 0x65d   :  { %v3330_v45 = vpop.xlane.xlu1 %3329 }
 0x65e   :  { %v3338_v46 = vadd.f32 %v3705_v43, %v3330_v45 }
 0x660   :  { %3340 = vst.msk [vmem:[%s4636_s11] sm:$0xff] %vm3339_vm9, %v3338_v46 }
 0x661   :  { %3345 = vsyncpa [#allocation4], 1 }
 0x662   :  { %3346 = vsyncpa [#allocation6], 1 }

</bundles_post_ra>
